<compile_context>
chip_gen: v7x
topology: tpu7x:2x2x1
jax: 0.10.0
libtpu: 0.0.40
codegen_flags: <defaults>
</compile_context>

<pallas_src>
import math
from functools import partial

import jax
import jax.numpy as jnp
from jax.experimental import pallas as pl
from jax.experimental.pallas import tpu as pltpu

BN_EPS = 1e-5  # nn.BatchNorm2d default


def _largest_divisor_leq(n, cap):
    for d in range(min(cap, n), 0, -1):
        if n % d == 0:
            return d
    return 1


def dwconv2d_bn_kernel(x_ref, wdw_ref, wpw_ref, bias_ref, o_ref,
                       xp_ref, dw_ref, *, k, bb, H, W, C, row_chunk, m_chunk):
    """One grid step = `bb` NHWC images: depthwise kxk (stride 1) + 1x1 conv
    (BN folded) + hardswish."""
    p = (k - 1) // 2
    f32 = jnp.float32

    # ---- hoisted small constants (loaded/built once per step) --------------
    # per-tap depthwise weights as (1, 1, C) broadcast-ready values
    w_taps = [wdw_ref[t:t + 1, :].reshape(1, 1, C) for t in range(k * k)]
    # column-validity masks for the XLU rolls (wrap-around columns -> zero)
    col = jax.lax.broadcasted_iota(jnp.int32, (1, W, C), 1)
    col_mask = {}
    for dj in range(k):
        dcol = dj - p
        if dcol != 0:
            col_mask[dcol] = (col + dcol >= 0) & (col + dcol < W)

    # ---- stage the input block into an H-padded VMEM scratch ---------------
    if p > 0:
        for b in range(bb):
            xp_ref[b, 0:p] = jnp.zeros((p, W, C), f32)
            xp_ref[b, p + H:p + H + p] = jnp.zeros((p, W, C), f32)
            for h0 in range(0, H, 8):               # copy in small row chunks
                hh = min(8, H - h0)
                xp_ref[b, p + h0:p + h0 + hh] = x_ref[b, h0:h0 + hh]
        src_ref = xp_ref
    else:
        src_ref = x_ref                              # k == 1: no padding needed

    # ---- depthwise conv: row shifts = free slices, col shifts = XLU rolls --
    for b in range(bb):
        for h0 in range(0, H, row_chunk):
            ch = min(row_chunk, H - h0)
            rows = src_ref[b, h0:h0 + ch + 2 * p]    # (ch + 2p, W, C) slab
            acc = None
            for dj in range(k):
                dcol = dj - p
                if dcol == 0:
                    shifted = rows
                else:
                    shifted = pltpu.roll(rows, shift=(-dcol) % W, axis=1)
                    shifted = jnp.where(col_mask[dcol], shifted, 0.0)
                for di in range(k):
                    tap = shifted[di:di + ch]        # leading-axis slice: free
                    term = tap * w_taps[di * k + dj]
                    acc = term if acc is None else acc + term
            row0 = (b * H + h0) * W
            dw_ref[row0:row0 + ch * W, :] = acc.reshape(ch * W, C)

    # ---- pointwise 1x1 (BN scale folded) on MXU + BN shift + hardswish -----
    wpw = wpw_ref[...]                               # (C, C)
    bias = bias_ref[...]                             # (1, C)
    total = bb * H * W
    for m0 in range(0, total, m_chunk):
        mm = min(m_chunk, total - m0)
        y = jnp.dot(dw_ref[m0:m0 + mm, :], wpw,
                    preferred_element_type=jnp.float32)
        y = y + bias
        y = y * jnp.clip(y + 3.0, 0.0, 6.0) * (1.0 / 6.0)
        o_ref[m0:m0 + mm, :] = y.astype(o_ref.dtype)


def dwconv2d_bn(x_nchw, params, *, kernel_size=3, stride=1, eps=BN_EPS,
                images_per_step=None):
    """Pallas implementation of DWConv2d_BN.forward (inference-mode BN)."""
    B, C, H, W = x_nchw.shape
    k = kernel_size
    if k % 2 != 1:
        raise NotImplementedError("odd kernel_size only")
    if stride != 1:
        raise NotImplementedError("Pallas path implements stride=1 only")
    p = (k - 1) // 2
    out_h, out_w = H, W

    # Images per grid step: batch enough for a decent MXU matmul M, but keep
    # the grid length >= 2 when possible (v7x has 2 TensorCores).
    if images_per_step is None:
        bb = 1
        for cand in (8, 4, 2):
            if B % cand == 0 and B // cand >= 2:
                bb = cand
                break
    else:
        bb = images_per_step
    assert B % bb == 0, "images_per_step must divide the batch"

    # Layout plumbing (once): NCHW -> NHWC so C lives in the lane dim.
    # NOTE: no host-side padding; the kernel pads H in a VMEM scratch.
    x = jnp.transpose(x_nchw, (0, 2, 3, 1))

    # Depthwise weight (C, 1, k, k) -> (k*k, C) slab.
    wdw = jnp.transpose(params["w_dw"][:, 0], (1, 2, 0)).reshape(k * k, C)
    # BatchNorm (inference) folded into the pointwise weight / bias.
    scale = params["bn_gamma"] / jnp.sqrt(params["bn_var"] + eps)
    shift = params["bn_beta"] - params["bn_mean"] * scale
    wpw = jnp.transpose(params["w_pw"][:, :, 0, 0], (1, 0)) * scale[None, :]
    bias = shift.reshape(1, C)

    total_rows = bb * out_h * out_w
    m_chunk = _largest_divisor_leq(total_rows, 512)
    # keep the (row_chunk + 2p, W, C) slab around ~12 vregs so slab + rolled
    # copy + accumulator + temporaries stay inside the 64-vreg file
    slab_rows = max(2 * p + 1, (12 * 1024) // max(W * C, 1))
    row_chunk = max(1, min(H, slab_rows - 2 * p))

    kernel = partial(dwconv2d_bn_kernel, k=k, bb=bb, H=H, W=W, C=C,
                     row_chunk=row_chunk, m_chunk=m_chunk)

    out_flat = pl.pallas_call(
        kernel,
        out_shape=jax.ShapeDtypeStruct((B * out_h * out_w, C), x.dtype),
        grid_spec=pltpu.PrefetchScalarGridSpec(
            num_scalar_prefetch=0,
            grid=(B // bb,),
            in_specs=[
                pl.BlockSpec((bb, H, W, C), lambda i: (i, 0, 0, 0)),
                pl.BlockSpec((k * k, C), lambda i: (0, 0)),
                pl.BlockSpec((C, C), lambda i: (0, 0)),
                pl.BlockSpec((1, C), lambda i: (0, 0)),
            ],
            out_specs=pl.BlockSpec((bb * out_h * out_w, C), lambda i: (i, 0)),
            scratch_shapes=[
                pltpu.VMEM((bb, H + 2 * p, W, C), jnp.float32),   # H-padded input
                pltpu.VMEM((bb * out_h * out_w, C), jnp.float32),  # depthwise out
            ],
        ),
        compiler_params=pltpu.CompilerParams(
            dimension_semantics=("parallel",),
            vmem_limit_bytes=32 * 1024 * 1024,
        ),
    )(x, wdw, wpw, bias)

    out = out_flat.reshape(B, out_h, out_w, C)
    return jnp.transpose(out, (0, 3, 1, 2))          # back to NCHW


def dwconv2d_bn_ref(x, params, *, kernel_size=3, stride=1, eps=BN_EPS):
    """Pure-JAX reference mirroring the PyTorch forward (eval-mode BN)."""
    C = x.shape[1]
    p = (kernel_size - 1) // 2
    y = jax.lax.conv_general_dilated(
        x, params["w_dw"], (stride, stride), [(p, p), (p, p)],
        dimension_numbers=("NCHW", "OIHW", "NCHW"),
        feature_group_count=C)
    y = jax.lax.conv_general_dilated(
        y, params["w_pw"], (1, 1), [(0, 0), (0, 0)],
        dimension_numbers=("NCHW", "OIHW", "NCHW"))
    scale = params["bn_gamma"] / jnp.sqrt(params["bn_var"] + eps)
    shift = params["bn_beta"] - params["bn_mean"] * scale
    y = y * scale[None, :, None, None] + shift[None, :, None, None]
    return y * jnp.clip(y + 3.0, 0.0, 6.0) / 6.0


def init_params(key, ch, kernel_size=3, bn_weight_init=1.0):
    """Mirror DWConv2d_BN.__init__ weight init (with nontrivial BN stats)."""
    k1, k2, k3, k4 = jax.random.split(key, 4)
    n_dw = kernel_size * kernel_size * ch
    n_pw = 1 * 1 * ch
    f32 = jnp.float32
    return {
        "w_dw": math.sqrt(2.0 / n_dw) * jax.random.normal(
            k1, (ch, 1, kernel_size, kernel_size), f32),
        "w_pw": math.sqrt(2.0 / n_pw) * jax.random.normal(
            k2, (ch, ch, 1, 1), f32),
        "bn_gamma": jnp.full((ch,), bn_weight_init, f32),
        "bn_beta": jnp.zeros((ch,), f32),
        # non-default running stats so the BN fold is actually exercised
        "bn_mean": 0.1 * jax.random.normal(k3, (ch,), f32),
        "bn_var": 1.0 + 0.1 * jax.random.uniform(k4, (ch,), f32),
    }


if __name__ == "__main__":
    B, C, H, W = 2, 128, 16, 16   # C=128 keeps the lane dimension dense
    kernel_size, stride = 3, 1

    key = jax.random.PRNGKey(0)
    kx, kp = jax.random.split(key)
    x = jax.random.normal(kx, (B, C, H, W), jnp.float32)
    params = init_params(kp, C, kernel_size=kernel_size)

    out = dwconv2d_bn(x, params, kernel_size=kernel_size, stride=stride)
    out = jax.block_until_ready(out)

    ref = dwconv2d_bn_ref(x, params, kernel_size=kernel_size, stride=stride)
    if not bool(jnp.allclose(out, ref, atol=1e-4, rtol=1e-4)):
        err = float(jnp.max(jnp.abs(out - ref)))
        raise AssertionError(f"Pallas output mismatch, max abs err = {err}")

    print("KERNEL_OK")
</pallas_src>

<mosaic_0001>
module attributes {stable_mosaic.version = 11 : i64} {
  func.func @dwconv2d_bn_kernel(%arg0: i32, %arg1: memref<1x16x16x128xf32, #tpu.memory_space<vmem>>, %arg2: memref<9x128xf32, #tpu.memory_space<vmem>>, %arg3: memref<128x128xf32, #tpu.memory_space<vmem>>, %arg4: memref<1x128xf32, #tpu.memory_space<vmem>>, %arg5: memref<256x128xf32, #tpu.memory_space<vmem>>, %arg6: memref<1x18x16x128xf32, #tpu.memory_space<vmem>>, %arg7: memref<256x128xf32, #tpu.memory_space<vmem>>) attributes {dimension_semantics = [#tpu.dimension_semantics<parallel>], iteration_bounds = array<i64: 2>, scalar_prefetch = 0 : i64, scratch_operands = 2 : i64, tpu.core_type = #tpu.core_type<tc>, window_params = [{transform_indices = @transform_0, window_bounds = array<i64: 1, 16, 16, 128>}, {pipeline_mode = #tpu.pipeline_mode<synchronous>, transform_indices = @transform_1, window_bounds = array<i64: 9, 128>}, {pipeline_mode = #tpu.pipeline_mode<synchronous>, transform_indices = @transform_2, window_bounds = array<i64: 128, 128>}, {pipeline_mode = #tpu.pipeline_mode<synchronous>, transform_indices = @transform_3, window_bounds = array<i64: 1, 128>}, {transform_indices = @transform_4, window_bounds = array<i64: 256, 128>}]} {
    %c0 = arith.constant 0 : index
    %c0_0 = arith.constant 0 : index
    %0 = vector.load %arg2[%c0, %c0_0] : memref<9x128xf32, #tpu.memory_space<vmem>>, vector<1x128xf32>
    %1 = vector.shape_cast %0 : vector<1x128xf32> to vector<1x1x128xf32>
    %c1 = arith.constant 1 : index
    %c0_1 = arith.constant 0 : index
    %2 = vector.load %arg2[%c1, %c0_1] : memref<9x128xf32, #tpu.memory_space<vmem>>, vector<1x128xf32>
    %3 = vector.shape_cast %2 : vector<1x128xf32> to vector<1x1x128xf32>
    %c2 = arith.constant 2 : index
    %c0_2 = arith.constant 0 : index
    %4 = vector.load %arg2[%c2, %c0_2] : memref<9x128xf32, #tpu.memory_space<vmem>>, vector<1x128xf32>
    %5 = vector.shape_cast %4 : vector<1x128xf32> to vector<1x1x128xf32>
    %c3 = arith.constant 3 : index
    %c0_3 = arith.constant 0 : index
    %6 = vector.load %arg2[%c3, %c0_3] : memref<9x128xf32, #tpu.memory_space<vmem>>, vector<1x128xf32>
    %7 = vector.shape_cast %6 : vector<1x128xf32> to vector<1x1x128xf32>
    %c4 = arith.constant 4 : index
    %c0_4 = arith.constant 0 : index
    %8 = vector.load %arg2[%c4, %c0_4] : memref<9x128xf32, #tpu.memory_space<vmem>>, vector<1x128xf32>
    %9 = vector.shape_cast %8 : vector<1x128xf32> to vector<1x1x128xf32>
    %c5 = arith.constant 5 : index
    %c0_5 = arith.constant 0 : index
    %10 = vector.load %arg2[%c5, %c0_5] : memref<9x128xf32, #tpu.memory_space<vmem>>, vector<1x128xf32>
    %11 = vector.shape_cast %10 : vector<1x128xf32> to vector<1x1x128xf32>
    %c6 = arith.constant 6 : index
    %c0_6 = arith.constant 0 : index
    %12 = vector.load %arg2[%c6, %c0_6] : memref<9x128xf32, #tpu.memory_space<vmem>>, vector<1x128xf32>
    %13 = vector.shape_cast %12 : vector<1x128xf32> to vector<1x1x128xf32>
    %c7 = arith.constant 7 : index
    %c0_7 = arith.constant 0 : index
    %14 = vector.load %arg2[%c7, %c0_7] : memref<9x128xf32, #tpu.memory_space<vmem>>, vector<1x128xf32>
    %15 = vector.shape_cast %14 : vector<1x128xf32> to vector<1x1x128xf32>
    %c8 = arith.constant 8 : index
    %c0_8 = arith.constant 0 : index
    %16 = vector.load %arg2[%c8, %c0_8] : memref<9x128xf32, #tpu.memory_space<vmem>>, vector<1x128xf32>
    %17 = vector.shape_cast %16 : vector<1x128xf32> to vector<1x1x128xf32>
    %18 = tpu.iota {dimensions = array<i32: 1>} : vector<1x16x128xi32>
    %c-1_i32 = arith.constant -1 : i32
    %19 = vector.broadcast %c-1_i32 : i32 to vector<1x16x128xi32>
    %20 = arith.addi %18, %19 : vector<1x16x128xi32>
    %c0_i32 = arith.constant 0 : i32
    %21 = vector.broadcast %c0_i32 : i32 to vector<1x16x128xi32>
    %22 = arith.cmpi sge, %20, %21 : vector<1x16x128xi32>
    %c-1_i32_9 = arith.constant -1 : i32
    %23 = vector.broadcast %c-1_i32_9 : i32 to vector<1x16x128xi32>
    %24 = arith.addi %18, %23 : vector<1x16x128xi32>
    %c16_i32 = arith.constant 16 : i32
    %25 = vector.broadcast %c16_i32 : i32 to vector<1x16x128xi32>
    %26 = arith.cmpi slt, %24, %25 : vector<1x16x128xi32>
    %27 = arith.andi %22, %26 : vector<1x16x128xi1>
    %c1_i32 = arith.constant 1 : i32
    %28 = vector.broadcast %c1_i32 : i32 to vector<1x16x128xi32>
    %29 = arith.addi %18, %28 : vector<1x16x128xi32>
    %c0_i32_10 = arith.constant 0 : i32
    %30 = vector.broadcast %c0_i32_10 : i32 to vector<1x16x128xi32>
    %31 = arith.cmpi sge, %29, %30 : vector<1x16x128xi32>
    %c1_i32_11 = arith.constant 1 : i32
    %32 = vector.broadcast %c1_i32_11 : i32 to vector<1x16x128xi32>
    %33 = arith.addi %18, %32 : vector<1x16x128xi32>
    %c16_i32_12 = arith.constant 16 : i32
    %34 = vector.broadcast %c16_i32_12 : i32 to vector<1x16x128xi32>
    %35 = arith.cmpi slt, %33, %34 : vector<1x16x128xi32>
    %36 = arith.andi %31, %35 : vector<1x16x128xi1>
    %cst = arith.constant 0.000000e+00 : f32
    %37 = vector.broadcast %cst : f32 to vector<1x16x128xf32>
    %c0_13 = arith.constant 0 : index
    %c0_14 = arith.constant 0 : index
    %c0_15 = arith.constant 0 : index
    %c0_16 = arith.constant 0 : index
    %38 = vector.load %arg6[%c0_13, %c0_14, %c0_15, %c0_16] : memref<1x18x16x128xf32, #tpu.memory_space<vmem>>, vector<1x1x16x128xf32>
    %39 = vector.shape_cast %38 : vector<1x1x16x128xf32> to vector<1x16x128xf32>
    %40 = vector.shape_cast %37 : vector<1x16x128xf32> to vector<1x1x16x128xf32>
    tpu.vector_store %arg6[%c0_13, %c0_14, %c0_15, %c0_16], %40 {strides = array<i32>} : memref<1x18x16x128xf32, #tpu.memory_space<vmem>>, vector<1x1x16x128xf32>,
    %cst_17 = arith.constant 0.000000e+00 : f32
    %41 = vector.broadcast %cst_17 : f32 to vector<1x16x128xf32>
    %c0_18 = arith.constant 0 : index
    %c17 = arith.constant 17 : index
    %c0_19 = arith.constant 0 : index
    %c0_20 = arith.constant 0 : index
    %42 = vector.load %arg6[%c0_18, %c17, %c0_19, %c0_20] : memref<1x18x16x128xf32, #tpu.memory_space<vmem>>, vector<1x1x16x128xf32>
    %43 = vector.shape_cast %42 : vector<1x1x16x128xf32> to vector<1x16x128xf32>
    %44 = vector.shape_cast %41 : vector<1x16x128xf32> to vector<1x1x16x128xf32>
    tpu.vector_store %arg6[%c0_18, %c17, %c0_19, %c0_20], %44 {strides = array<i32>} : memref<1x18x16x128xf32, #tpu.memory_space<vmem>>, vector<1x1x16x128xf32>,
    %c0_21 = arith.constant 0 : index
    %c0_22 = arith.constant 0 : index
    %c0_23 = arith.constant 0 : index
    %c0_24 = arith.constant 0 : index
    %45 = vector.load %arg1[%c0_21, %c0_22, %c0_23, %c0_24] : memref<1x16x16x128xf32, #tpu.memory_space<vmem>>, vector<1x8x16x128xf32>
    %46 = vector.shape_cast %45 : vector<1x8x16x128xf32> to vector<8x16x128xf32>
    %c0_25 = arith.constant 0 : index
    %c1_26 = arith.constant 1 : index
    %c0_27 = arith.constant 0 : index
    %c0_28 = arith.constant 0 : index
    %47 = vector.load %arg6[%c0_25, %c1_26, %c0_27, %c0_28] : memref<1x18x16x128xf32, #tpu.memory_space<vmem>>, vector<1x8x16x128xf32>
    %48 = vector.shape_cast %47 : vector<1x8x16x128xf32> to vector<8x16x128xf32>
    %49 = vector.shape_cast %46 : vector<8x16x128xf32> to vector<1x8x16x128xf32>
    tpu.vector_store %arg6[%c0_25, %c1_26, %c0_27, %c0_28], %49 {strides = array<i32>} : memref<1x18x16x128xf32, #tpu.memory_space<vmem>>, vector<1x8x16x128xf32>,
    %c0_29 = arith.constant 0 : index
    %c8_30 = arith.constant 8 : index
    %c0_31 = arith.constant 0 : index
    %c0_32 = arith.constant 0 : index
    %50 = vector.load %arg1[%c0_29, %c8_30, %c0_31, %c0_32] : memref<1x16x16x128xf32, #tpu.memory_space<vmem>>, vector<1x8x16x128xf32>
    %51 = vector.shape_cast %50 : vector<1x8x16x128xf32> to vector<8x16x128xf32>
    %c0_33 = arith.constant 0 : index
    %c9 = arith.constant 9 : index
    %c0_34 = arith.constant 0 : index
    %c0_35 = arith.constant 0 : index
    %52 = vector.load %arg6[%c0_33, %c9, %c0_34, %c0_35] : memref<1x18x16x128xf32, #tpu.memory_space<vmem>>, vector<1x8x16x128xf32>
    %53 = vector.shape_cast %52 : vector<1x8x16x128xf32> to vector<8x16x128xf32>
    %54 = vector.shape_cast %51 : vector<8x16x128xf32> to vector<1x8x16x128xf32>
    tpu.vector_store %arg6[%c0_33, %c9, %c0_34, %c0_35], %54 {strides = array<i32>} : memref<1x18x16x128xf32, #tpu.memory_space<vmem>>, vector<1x8x16x128xf32>,
    %c0_36 = arith.constant 0 : index
    %c0_37 = arith.constant 0 : index
    %c0_38 = arith.constant 0 : index
    %c0_39 = arith.constant 0 : index
    %55 = vector.load %arg6[%c0_36, %c0_37, %c0_38, %c0_39] : memref<1x18x16x128xf32, #tpu.memory_space<vmem>>, vector<1x6x16x128xf32>
    %56 = vector.shape_cast %55 : vector<1x6x16x128xf32> to vector<6x16x128xf32>
    %c1_i32_40 = arith.constant 1 : i32
    %57 = tpu.dynamic_rotate %56 by %c1_i32_40 dim 1 : vector<6x16x128xf32>, i32 -> vector<6x16x128xf32>
    %cst_41 = arith.constant 0.000000e+00 : f32
    %58 = vector.shape_cast %27 : vector<1x16x128xi1> to vector<1x16x128xi1>
    %59 = vector.broadcast %58 : vector<1x16x128xi1> to vector<6x16x128xi1>
    %60 = vector.broadcast %cst_41 : f32 to vector<6x16x128xf32>
    %61 = arith.select %59, %57, %60 : vector<6x16x128xi1>, vector<6x16x128xf32>
    %62 = vector.extract_strided_slice %61 {offsets = [0, 0, 0], sizes = [4, 16, 128], strides = [1, 1, 1]} : vector<6x16x128xf32> to vector<4x16x128xf32>
    %63 = vector.broadcast %1 : vector<1x1x128xf32> to vector<4x16x128xf32>
    %64 = arith.mulf %62, %63 : vector<4x16x128xf32>
    %65 = vector.extract_strided_slice %61 {offsets = [1, 0, 0], sizes = [4, 16, 128], strides = [1, 1, 1]} : vector<6x16x128xf32> to vector<4x16x128xf32>
    %66 = vector.broadcast %7 : vector<1x1x128xf32> to vector<4x16x128xf32>
    %67 = arith.mulf %65, %66 : vector<4x16x128xf32>
    %68 = arith.addf %64, %67 : vector<4x16x128xf32>
    %69 = vector.extract_strided_slice %61 {offsets = [2, 0, 0], sizes = [4, 16, 128], strides = [1, 1, 1]} : vector<6x16x128xf32> to vector<4x16x128xf32>
    %70 = vector.broadcast %13 : vector<1x1x128xf32> to vector<4x16x128xf32>
    %71 = arith.mulf %69, %70 : vector<4x16x128xf32>
    %72 = arith.addf %68, %71 : vector<4x16x128xf32>
    %73 = vector.extract_strided_slice %56 {offsets = [0, 0, 0], sizes = [4, 16, 128], strides = [1, 1, 1]} : vector<6x16x128xf32> to vector<4x16x128xf32>
    %74 = vector.broadcast %3 : vector<1x1x128xf32> to vector<4x16x128xf32>
    %75 = arith.mulf %73, %74 : vector<4x16x128xf32>
    %76 = arith.addf %72, %75 : vector<4x16x128xf32>
    %77 = vector.extract_strided_slice %56 {offsets = [1, 0, 0], sizes = [4, 16, 128], strides = [1, 1, 1]} : vector<6x16x128xf32> to vector<4x16x128xf32>
    %78 = vector.broadcast %9 : vector<1x1x128xf32> to vector<4x16x128xf32>
    %79 = arith.mulf %77, %78 : vector<4x16x128xf32>
    %80 = arith.addf %76, %79 : vector<4x16x128xf32>
    %81 = vector.extract_strided_slice %56 {offsets = [2, 0, 0], sizes = [4, 16, 128], strides = [1, 1, 1]} : vector<6x16x128xf32> to vector<4x16x128xf32>
    %82 = vector.broadcast %15 : vector<1x1x128xf32> to vector<4x16x128xf32>
    %83 = arith.mulf %81, %82 : vector<4x16x128xf32>
    %84 = arith.addf %80, %83 : vector<4x16x128xf32>
    %c15_i32 = arith.constant 15 : i32
    %85 = tpu.dynamic_rotate %56 by %c15_i32 dim 1 : vector<6x16x128xf32>, i32 -> vector<6x16x128xf32>
    %cst_42 = arith.constant 0.000000e+00 : f32
    %86 = vector.shape_cast %36 : vector<1x16x128xi1> to vector<1x16x128xi1>
    %87 = vector.broadcast %86 : vector<1x16x128xi1> to vector<6x16x128xi1>
    %88 = vector.broadcast %cst_42 : f32 to vector<6x16x128xf32>
    %89 = arith.select %87, %85, %88 : vector<6x16x128xi1>, vector<6x16x128xf32>
    %90 = vector.extract_strided_slice %89 {offsets = [0, 0, 0], sizes = [4, 16, 128], strides = [1, 1, 1]} : vector<6x16x128xf32> to vector<4x16x128xf32>
    %91 = vector.broadcast %5 : vector<1x1x128xf32> to vector<4x16x128xf32>
    %92 = arith.mulf %90, %91 : vector<4x16x128xf32>
    %93 = arith.addf %84, %92 : vector<4x16x128xf32>
    %94 = vector.extract_strided_slice %89 {offsets = [1, 0, 0], sizes = [4, 16, 128], strides = [1, 1, 1]} : vector<6x16x128xf32> to vector<4x16x128xf32>
    %95 = vector.broadcast %11 : vector<1x1x128xf32> to vector<4x16x128xf32>
    %96 = arith.mulf %94, %95 : vector<4x16x128xf32>
    %97 = arith.addf %93, %96 : vector<4x16x128xf32>
    %98 = vector.extract_strided_slice %89 {offsets = [2, 0, 0], sizes = [4, 16, 128], strides = [1, 1, 1]} : vector<6x16x128xf32> to vector<4x16x128xf32>
    %99 = vector.broadcast %17 : vector<1x1x128xf32> to vector<4x16x128xf32>
    %100 = arith.mulf %98, %99 : vector<4x16x128xf32>
    %101 = arith.addf %97, %100 : vector<4x16x128xf32>
    %102 = vector.shape_cast %101 : vector<4x16x128xf32> to vector<64x128xf32>
    %c0_43 = arith.constant 0 : index
    %c0_44 = arith.constant 0 : index
    %103 = vector.load %arg7[%c0_43, %c0_44] : memref<256x128xf32, #tpu.memory_space<vmem>>, vector<64x128xf32>
    tpu.vector_store %arg7[%c0_43, %c0_44], %102 {strides = array<i32>} : memref<256x128xf32, #tpu.memory_space<vmem>>, vector<64x128xf32>,
    %c0_45 = arith.constant 0 : index
    %c4_46 = arith.constant 4 : index
    %c0_47 = arith.constant 0 : index
    %c0_48 = arith.constant 0 : index
    %104 = vector.load %arg6[%c0_45, %c4_46, %c0_47, %c0_48] : memref<1x18x16x128xf32, #tpu.memory_space<vmem>>, vector<1x6x16x128xf32>
    %105 = vector.shape_cast %104 : vector<1x6x16x128xf32> to vector<6x16x128xf32>
    %c1_i32_49 = arith.constant 1 : i32
    %106 = tpu.dynamic_rotate %105 by %c1_i32_49 dim 1 : vector<6x16x128xf32>, i32 -> vector<6x16x128xf32>
    %cst_50 = arith.constant 0.000000e+00 : f32
    %107 = vector.shape_cast %27 : vector<1x16x128xi1> to vector<1x16x128xi1>
    %108 = vector.broadcast %107 : vector<1x16x128xi1> to vector<6x16x128xi1>
    %109 = vector.broadcast %cst_50 : f32 to vector<6x16x128xf32>
    %110 = arith.select %108, %106, %109 : vector<6x16x128xi1>, vector<6x16x128xf32>
    %111 = vector.extract_strided_slice %110 {offsets = [0, 0, 0], sizes = [4, 16, 128], strides = [1, 1, 1]} : vector<6x16x128xf32> to vector<4x16x128xf32>
    %112 = vector.broadcast %1 : vector<1x1x128xf32> to vector<4x16x128xf32>
    %113 = arith.mulf %111, %112 : vector<4x16x128xf32>
    %114 = vector.extract_strided_slice %110 {offsets = [1, 0, 0], sizes = [4, 16, 128], strides = [1, 1, 1]} : vector<6x16x128xf32> to vector<4x16x128xf32>
    %115 = vector.broadcast %7 : vector<1x1x128xf32> to vector<4x16x128xf32>
    %116 = arith.mulf %114, %115 : vector<4x16x128xf32>
    %117 = arith.addf %113, %116 : vector<4x16x128xf32>
    %118 = vector.extract_strided_slice %110 {offsets = [2, 0, 0], sizes = [4, 16, 128], strides = [1, 1, 1]} : vector<6x16x128xf32> to vector<4x16x128xf32>
    %119 = vector.broadcast %13 : vector<1x1x128xf32> to vector<4x16x128xf32>
    %120 = arith.mulf %118, %119 : vector<4x16x128xf32>
    %121 = arith.addf %117, %120 : vector<4x16x128xf32>
    %122 = vector.extract_strided_slice %105 {offsets = [0, 0, 0], sizes = [4, 16, 128], strides = [1, 1, 1]} : vector<6x16x128xf32> to vector<4x16x128xf32>
    %123 = vector.broadcast %3 : vector<1x1x128xf32> to vector<4x16x128xf32>
    %124 = arith.mulf %122, %123 : vector<4x16x128xf32>
    %125 = arith.addf %121, %124 : vector<4x16x128xf32>
    %126 = vector.extract_strided_slice %105 {offsets = [1, 0, 0], sizes = [4, 16, 128], strides = [1, 1, 1]} : vector<6x16x128xf32> to vector<4x16x128xf32>
    %127 = vector.broadcast %9 : vector<1x1x128xf32> to vector<4x16x128xf32>
    %128 = arith.mulf %126, %127 : vector<4x16x128xf32>
    %129 = arith.addf %125, %128 : vector<4x16x128xf32>
    %130 = vector.extract_strided_slice %105 {offsets = [2, 0, 0], sizes = [4, 16, 128], strides = [1, 1, 1]} : vector<6x16x128xf32> to vector<4x16x128xf32>
    %131 = vector.broadcast %15 : vector<1x1x128xf32> to vector<4x16x128xf32>
    %132 = arith.mulf %130, %131 : vector<4x16x128xf32>
    %133 = arith.addf %129, %132 : vector<4x16x128xf32>
    %c15_i32_51 = arith.constant 15 : i32
    %134 = tpu.dynamic_rotate %105 by %c15_i32_51 dim 1 : vector<6x16x128xf32>, i32 -> vector<6x16x128xf32>
    %cst_52 = arith.constant 0.000000e+00 : f32
    %135 = vector.shape_cast %36 : vector<1x16x128xi1> to vector<1x16x128xi1>
    %136 = vector.broadcast %135 : vector<1x16x128xi1> to vector<6x16x128xi1>
    %137 = vector.broadcast %cst_52 : f32 to vector<6x16x128xf32>
    %138 = arith.select %136, %134, %137 : vector<6x16x128xi1>, vector<6x16x128xf32>
    %139 = vector.extract_strided_slice %138 {offsets = [0, 0, 0], sizes = [4, 16, 128], strides = [1, 1, 1]} : vector<6x16x128xf32> to vector<4x16x128xf32>
    %140 = vector.broadcast %5 : vector<1x1x128xf32> to vector<4x16x128xf32>
    %141 = arith.mulf %139, %140 : vector<4x16x128xf32>
    %142 = arith.addf %133, %141 : vector<4x16x128xf32>
    %143 = vector.extract_strided_slice %138 {offsets = [1, 0, 0], sizes = [4, 16, 128], strides = [1, 1, 1]} : vector<6x16x128xf32> to vector<4x16x128xf32>
    %144 = vector.broadcast %11 : vector<1x1x128xf32> to vector<4x16x128xf32>
    %145 = arith.mulf %143, %144 : vector<4x16x128xf32>
    %146 = arith.addf %142, %145 : vector<4x16x128xf32>
    %147 = vector.extract_strided_slice %138 {offsets = [2, 0, 0], sizes = [4, 16, 128], strides = [1, 1, 1]} : vector<6x16x128xf32> to vector<4x16x128xf32>
    %148 = vector.broadcast %17 : vector<1x1x128xf32> to vector<4x16x128xf32>
    %149 = arith.mulf %147, %148 : vector<4x16x128xf32>
    %150 = arith.addf %146, %149 : vector<4x16x128xf32>
    %151 = vector.shape_cast %150 : vector<4x16x128xf32> to vector<64x128xf32>
    %c64 = arith.constant 64 : index
    %c0_53 = arith.constant 0 : index
    %152 = vector.load %arg7[%c64, %c0_53] : memref<256x128xf32, #tpu.memory_space<vmem>>, vector<64x128xf32>
    tpu.vector_store %arg7[%c64, %c0_53], %151 {strides = array<i32>} : memref<256x128xf32, #tpu.memory_space<vmem>>, vector<64x128xf32>,
    %c0_54 = arith.constant 0 : index
    %c8_55 = arith.constant 8 : index
    %c0_56 = arith.constant 0 : index
    %c0_57 = arith.constant 0 : index
    %153 = vector.load %arg6[%c0_54, %c8_55, %c0_56, %c0_57] : memref<1x18x16x128xf32, #tpu.memory_space<vmem>>, vector<1x6x16x128xf32>
    %154 = vector.shape_cast %153 : vector<1x6x16x128xf32> to vector<6x16x128xf32>
    %c1_i32_58 = arith.constant 1 : i32
    %155 = tpu.dynamic_rotate %154 by %c1_i32_58 dim 1 : vector<6x16x128xf32>, i32 -> vector<6x16x128xf32>
    %cst_59 = arith.constant 0.000000e+00 : f32
    %156 = vector.shape_cast %27 : vector<1x16x128xi1> to vector<1x16x128xi1>
    %157 = vector.broadcast %156 : vector<1x16x128xi1> to vector<6x16x128xi1>
    %158 = vector.broadcast %cst_59 : f32 to vector<6x16x128xf32>
    %159 = arith.select %157, %155, %158 : vector<6x16x128xi1>, vector<6x16x128xf32>
    %160 = vector.extract_strided_slice %159 {offsets = [0, 0, 0], sizes = [4, 16, 128], strides = [1, 1, 1]} : vector<6x16x128xf32> to vector<4x16x128xf32>
    %161 = vector.broadcast %1 : vector<1x1x128xf32> to vector<4x16x128xf32>
    %162 = arith.mulf %160, %161 : vector<4x16x128xf32>
    %163 = vector.extract_strided_slice %159 {offsets = [1, 0, 0], sizes = [4, 16, 128], strides = [1, 1, 1]} : vector<6x16x128xf32> to vector<4x16x128xf32>
    %164 = vector.broadcast %7 : vector<1x1x128xf32> to vector<4x16x128xf32>
    %165 = arith.mulf %163, %164 : vector<4x16x128xf32>
    %166 = arith.addf %162, %165 : vector<4x16x128xf32>
    %167 = vector.extract_strided_slice %159 {offsets = [2, 0, 0], sizes = [4, 16, 128], strides = [1, 1, 1]} : vector<6x16x128xf32> to vector<4x16x128xf32>
    %168 = vector.broadcast %13 : vector<1x1x128xf32> to vector<4x16x128xf32>
    %169 = arith.mulf %167, %168 : vector<4x16x128xf32>
    %170 = arith.addf %166, %169 : vector<4x16x128xf32>
    %171 = vector.extract_strided_slice %154 {offsets = [0, 0, 0], sizes = [4, 16, 128], strides = [1, 1, 1]} : vector<6x16x128xf32> to vector<4x16x128xf32>
    %172 = vector.broadcast %3 : vector<1x1x128xf32> to vector<4x16x128xf32>
    %173 = arith.mulf %171, %172 : vector<4x16x128xf32>
    %174 = arith.addf %170, %173 : vector<4x16x128xf32>
    %175 = vector.extract_strided_slice %154 {offsets = [1, 0, 0], sizes = [4, 16, 128], strides = [1, 1, 1]} : vector<6x16x128xf32> to vector<4x16x128xf32>
    %176 = vector.broadcast %9 : vector<1x1x128xf32> to vector<4x16x128xf32>
    %177 = arith.mulf %175, %176 : vector<4x16x128xf32>
    %178 = arith.addf %174, %177 : vector<4x16x128xf32>
    %179 = vector.extract_strided_slice %154 {offsets = [2, 0, 0], sizes = [4, 16, 128], strides = [1, 1, 1]} : vector<6x16x128xf32> to vector<4x16x128xf32>
    %180 = vector.broadcast %15 : vector<1x1x128xf32> to vector<4x16x128xf32>
    %181 = arith.mulf %179, %180 : vector<4x16x128xf32>
    %182 = arith.addf %178, %181 : vector<4x16x128xf32>
    %c15_i32_60 = arith.constant 15 : i32
    %183 = tpu.dynamic_rotate %154 by %c15_i32_60 dim 1 : vector<6x16x128xf32>, i32 -> vector<6x16x128xf32>
    %cst_61 = arith.constant 0.000000e+00 : f32
    %184 = vector.shape_cast %36 : vector<1x16x128xi1> to vector<1x16x128xi1>
    %185 = vector.broadcast %184 : vector<1x16x128xi1> to vector<6x16x128xi1>
    %186 = vector.broadcast %cst_61 : f32 to vector<6x16x128xf32>
    %187 = arith.select %185, %183, %186 : vector<6x16x128xi1>, vector<6x16x128xf32>
    %188 = vector.extract_strided_slice %187 {offsets = [0, 0, 0], sizes = [4, 16, 128], strides = [1, 1, 1]} : vector<6x16x128xf32> to vector<4x16x128xf32>
    %189 = vector.broadcast %5 : vector<1x1x128xf32> to vector<4x16x128xf32>
    %190 = arith.mulf %188, %189 : vector<4x16x128xf32>
    %191 = arith.addf %182, %190 : vector<4x16x128xf32>
    %192 = vector.extract_strided_slice %187 {offsets = [1, 0, 0], sizes = [4, 16, 128], strides = [1, 1, 1]} : vector<6x16x128xf32> to vector<4x16x128xf32>
    %193 = vector.broadcast %11 : vector<1x1x128xf32> to vector<4x16x128xf32>
    %194 = arith.mulf %192, %193 : vector<4x16x128xf32>
    %195 = arith.addf %191, %194 : vector<4x16x128xf32>
    %196 = vector.extract_strided_slice %187 {offsets = [2, 0, 0], sizes = [4, 16, 128], strides = [1, 1, 1]} : vector<6x16x128xf32> to vector<4x16x128xf32>
    %197 = vector.broadcast %17 : vector<1x1x128xf32> to vector<4x16x128xf32>
    %198 = arith.mulf %196, %197 : vector<4x16x128xf32>
    %199 = arith.addf %195, %198 : vector<4x16x128xf32>
    %200 = vector.shape_cast %199 : vector<4x16x128xf32> to vector<64x128xf32>
    %c128 = arith.constant 128 : index
    %c0_62 = arith.constant 0 : index
    %201 = vector.load %arg7[%c128, %c0_62] : memref<256x128xf32, #tpu.memory_space<vmem>>, vector<64x128xf32>
    tpu.vector_store %arg7[%c128, %c0_62], %200 {strides = array<i32>} : memref<256x128xf32, #tpu.memory_space<vmem>>, vector<64x128xf32>,
    %c0_63 = arith.constant 0 : index
    %c12 = arith.constant 12 : index
    %c0_64 = arith.constant 0 : index
    %c0_65 = arith.constant 0 : index
    %202 = vector.load %arg6[%c0_63, %c12, %c0_64, %c0_65] : memref<1x18x16x128xf32, #tpu.memory_space<vmem>>, vector<1x6x16x128xf32>
    %203 = vector.shape_cast %202 : vector<1x6x16x128xf32> to vector<6x16x128xf32>
    %c1_i32_66 = arith.constant 1 : i32
    %204 = tpu.dynamic_rotate %203 by %c1_i32_66 dim 1 : vector<6x16x128xf32>, i32 -> vector<6x16x128xf32>
    %cst_67 = arith.constant 0.000000e+00 : f32
    %205 = vector.shape_cast %27 : vector<1x16x128xi1> to vector<1x16x128xi1>
    %206 = vector.broadcast %205 : vector<1x16x128xi1> to vector<6x16x128xi1>
    %207 = vector.broadcast %cst_67 : f32 to vector<6x16x128xf32>
    %208 = arith.select %206, %204, %207 : vector<6x16x128xi1>, vector<6x16x128xf32>
    %209 = vector.extract_strided_slice %208 {offsets = [0, 0, 0], sizes = [4, 16, 128], strides = [1, 1, 1]} : vector<6x16x128xf32> to vector<4x16x128xf32>
    %210 = vector.broadcast %1 : vector<1x1x128xf32> to vector<4x16x128xf32>
    %211 = arith.mulf %209, %210 : vector<4x16x128xf32>
    %212 = vector.extract_strided_slice %208 {offsets = [1, 0, 0], sizes = [4, 16, 128], strides = [1, 1, 1]} : vector<6x16x128xf32> to vector<4x16x128xf32>
    %213 = vector.broadcast %7 : vector<1x1x128xf32> to vector<4x16x128xf32>
    %214 = arith.mulf %212, %213 : vector<4x16x128xf32>
    %215 = arith.addf %211, %214 : vector<4x16x128xf32>
    %216 = vector.extract_strided_slice %208 {offsets = [2, 0, 0], sizes = [4, 16, 128], strides = [1, 1, 1]} : vector<6x16x128xf32> to vector<4x16x128xf32>
    %217 = vector.broadcast %13 : vector<1x1x128xf32> to vector<4x16x128xf32>
    %218 = arith.mulf %216, %217 : vector<4x16x128xf32>
    %219 = arith.addf %215, %218 : vector<4x16x128xf32>
    %220 = vector.extract_strided_slice %203 {offsets = [0, 0, 0], sizes = [4, 16, 128], strides = [1, 1, 1]} : vector<6x16x128xf32> to vector<4x16x128xf32>
    %221 = vector.broadcast %3 : vector<1x1x128xf32> to vector<4x16x128xf32>
    %222 = arith.mulf %220, %221 : vector<4x16x128xf32>
    %223 = arith.addf %219, %222 : vector<4x16x128xf32>
    %224 = vector.extract_strided_slice %203 {offsets = [1, 0, 0], sizes = [4, 16, 128], strides = [1, 1, 1]} : vector<6x16x128xf32> to vector<4x16x128xf32>
    %225 = vector.broadcast %9 : vector<1x1x128xf32> to vector<4x16x128xf32>
    %226 = arith.mulf %224, %225 : vector<4x16x128xf32>
    %227 = arith.addf %223, %226 : vector<4x16x128xf32>
    %228 = vector.extract_strided_slice %203 {offsets = [2, 0, 0], sizes = [4, 16, 128], strides = [1, 1, 1]} : vector<6x16x128xf32> to vector<4x16x128xf32>
    %229 = vector.broadcast %15 : vector<1x1x128xf32> to vector<4x16x128xf32>
    %230 = arith.mulf %228, %229 : vector<4x16x128xf32>
    %231 = arith.addf %227, %230 : vector<4x16x128xf32>
    %c15_i32_68 = arith.constant 15 : i32
    %232 = tpu.dynamic_rotate %203 by %c15_i32_68 dim 1 : vector<6x16x128xf32>, i32 -> vector<6x16x128xf32>
    %cst_69 = arith.constant 0.000000e+00 : f32
    %233 = vector.shape_cast %36 : vector<1x16x128xi1> to vector<1x16x128xi1>
    %234 = vector.broadcast %233 : vector<1x16x128xi1> to vector<6x16x128xi1>
    %235 = vector.broadcast %cst_69 : f32 to vector<6x16x128xf32>
    %236 = arith.select %234, %232, %235 : vector<6x16x128xi1>, vector<6x16x128xf32>
    %237 = vector.extract_strided_slice %236 {offsets = [0, 0, 0], sizes = [4, 16, 128], strides = [1, 1, 1]} : vector<6x16x128xf32> to vector<4x16x128xf32>
    %238 = vector.broadcast %5 : vector<1x1x128xf32> to vector<4x16x128xf32>
    %239 = arith.mulf %237, %238 : vector<4x16x128xf32>
    %240 = arith.addf %231, %239 : vector<4x16x128xf32>
    %241 = vector.extract_strided_slice %236 {offsets = [1, 0, 0], sizes = [4, 16, 128], strides = [1, 1, 1]} : vector<6x16x128xf32> to vector<4x16x128xf32>
    %242 = vector.broadcast %11 : vector<1x1x128xf32> to vector<4x16x128xf32>
    %243 = arith.mulf %241, %242 : vector<4x16x128xf32>
    %244 = arith.addf %240, %243 : vector<4x16x128xf32>
    %245 = vector.extract_strided_slice %236 {offsets = [2, 0, 0], sizes = [4, 16, 128], strides = [1, 1, 1]} : vector<6x16x128xf32> to vector<4x16x128xf32>
    %246 = vector.broadcast %17 : vector<1x1x128xf32> to vector<4x16x128xf32>
    %247 = arith.mulf %245, %246 : vector<4x16x128xf32>
    %248 = arith.addf %244, %247 : vector<4x16x128xf32>
    %249 = vector.shape_cast %248 : vector<4x16x128xf32> to vector<64x128xf32>
    %c192 = arith.constant 192 : index
    %c0_70 = arith.constant 0 : index
    %250 = vector.load %arg7[%c192, %c0_70] : memref<256x128xf32, #tpu.memory_space<vmem>>, vector<64x128xf32>
    tpu.vector_store %arg7[%c192, %c0_70], %249 {strides = array<i32>} : memref<256x128xf32, #tpu.memory_space<vmem>>, vector<64x128xf32>,
    %c0_71 = arith.constant 0 : index
    %c0_72 = arith.constant 0 : index
    %251 = vector.load %arg3[%c0_71, %c0_72] : memref<128x128xf32, #tpu.memory_space<vmem>>, vector<128x128xf32>
    %c0_73 = arith.constant 0 : index
    %c0_74 = arith.constant 0 : index
    %252 = vector.load %arg4[%c0_73, %c0_74] : memref<1x128xf32, #tpu.memory_space<vmem>>, vector<1x128xf32>
    %c0_75 = arith.constant 0 : index
    %c0_76 = arith.constant 0 : index
    %253 = vector.load %arg7[%c0_75, %c0_76] : memref<256x128xf32, #tpu.memory_space<vmem>>, vector<256x128xf32>
    %cst_77 = arith.constant dense<0.000000e+00> : vector<256x128xf32>
    %254 = tpu.matmul %253, %251, %cst_77 {dimension_numbers = #tpu.dot_dimension_numbers<[1], [0], [0], [1], [0, 0, 1, 1], [], []>} : vector<256x128xf32>, vector<128x128xf32>, vector<256x128xf32> -> vector<256x128xf32>
    %255 = vector.broadcast %252 : vector<1x128xf32> to vector<256x128xf32>
    %256 = arith.addf %254, %255 : vector<256x128xf32>
    %cst_78 = arith.constant 3.000000e+00 : f32
    %257 = vector.broadcast %cst_78 : f32 to vector<256x128xf32>
    %258 = arith.addf %256, %257 : vector<256x128xf32>
    %cst_79 = arith.constant 0.000000e+00 : f32
    %cst_80 = arith.constant 6.000000e+00 : f32
    %259 = vector.broadcast %cst_79 : f32 to vector<256x128xf32>
    %260 = arith.maximumf %259, %258 : vector<256x128xf32>
    %261 = vector.broadcast %cst_80 : f32 to vector<256x128xf32>
    %262 = arith.minimumf %261, %260 : vector<256x128xf32>
    %263 = arith.mulf %256, %262 : vector<256x128xf32>
    %cst_81 = arith.constant 0.166666672 : f32
    %264 = vector.broadcast %cst_81 : f32 to vector<256x128xf32>
    %265 = arith.mulf %263, %264 : vector<256x128xf32>
    %c0_82 = arith.constant 0 : index
    %c0_83 = arith.constant 0 : index
    %266 = vector.load %arg5[%c0_82, %c0_83] : memref<256x128xf32, #tpu.memory_space<vmem>>, vector<256x128xf32>
    tpu.vector_store %arg5[%c0_82, %c0_83], %265 {strides = array<i32>} : memref<256x128xf32, #tpu.memory_space<vmem>>, vector<256x128xf32>,
    return
  }
  func.func @transform_0(%arg0: i32) -> (i32, i32, i32, i32) {
    %c0_i32 = arith.constant 0 : i32
    %c0_i32_0 = arith.constant 0 : i32
    %c0_i32_1 = arith.constant 0 : i32
    %c0_i32_2 = arith.constant 0 : i32
    return %arg0, %c0_i32, %c0_i32_0, %c0_i32_1 : i32, i32, i32, i32
  }
  func.func @transform_1(%arg0: i32) -> (i32, i32) {
    %c0_i32 = arith.constant 0 : i32
    %c0_i32_0 = arith.constant 0 : i32
    %c0_i32_1 = arith.constant 0 : i32
    return %c0_i32, %c0_i32_0 : i32, i32
  }
  func.func @transform_2(%arg0: i32) -> (i32, i32) {
    %c0_i32 = arith.constant 0 : i32
    %c0_i32_0 = arith.constant 0 : i32
    %c0_i32_1 = arith.constant 0 : i32
    return %c0_i32, %c0_i32_0 : i32, i32
  }
  func.func @transform_3(%arg0: i32) -> (i32, i32) {
    %c0_i32 = arith.constant 0 : i32
    %c0_i32_0 = arith.constant 0 : i32
    %c0_i32_1 = arith.constant 0 : i32
    return %c0_i32, %c0_i32_0 : i32, i32
  }
  func.func @transform_4(%arg0: i32) -> (i32, i32) {
    %c0_i32 = arith.constant 0 : i32
    %c0_i32_0 = arith.constant 0 : i32
    return %arg0, %c0_i32 : i32, i32
  }
}

</mosaic_0001>

<bundles_post_ra>
// kernel: tpu_custom_call.1
= control target key start
LH: loop header
LB: loop body
LE: loop exit
PB: predicated region body
PF: predicated region fallthrough
CT: control target
= control target key end

     0   :  { %9 = vsyncpa [#allocation5], 0  ;;  %s3973_s0 = inlined_call_operand.hbm [shape: f32[2,16,16,128], index: 0, kind: input, shape index: {}]   ;;  %s3974_s1 = inlined_call_operand.hbm [shape: f32[9,128], index: 1, kind: input, shape index: {}]   ;;  %s3975_s2 = inlined_call_operand.hbm [shape: f32[128,128], index: 2, kind: input, shape index: {}]   ;;  %s3976_s3 = inlined_call_operand.vmem [shape: f32[1,128], index: 3, kind: input, shape index: {}]   ;;  %s3977_s4 = inlined_call_operand.hbm [shape: f32[512,128], index: 4, kind: output, shape index: {}]  }
   0x1   :  { %11 = vsyncpa [#allocation5 + $0x1], 0 }
   0x2   :  { %12 = vsyncpa [#allocation8], 0 }
   0x3   :  { %13 = vsyncpa [#allocation6], 0 }
   0x4   :  { %15 = vsyncpa [#allocation6 + $0x1], 0  ;;  %s2384_s15 = smov 0   ;;  %s2386_s16 = smov 0  }
   0x5   :  { %s2388_s17 = smov 0   ;;  %s2390_s18 = smov 0  }
   0x6 LB: > { %s2405_s19 = sadd.s32 4294967295, %s2348_s18   ;;  %s1885_s20 = sadd.s32 4294967294, %s2348_s18   ;;  %s2348_s18 = sphi %s2390_s18, %s4093_s18   ;;  %s2344_s17 = sphi %s2388_s17, %s4092_s17   ;;  %s2340_s16 = sphi %s2386_s16, %s4091_s16   ;;  %s2336_s15 = sphi %s2384_s15, %s4090_s15  }
   0x7   : > { %p41_p0 = scmp.ne.s32.totalorder %s2340_s16, %s2336_s15  ;;  %p3978_p1 = scmp.eq.s32.totalorder %s2405_s19, 0 }
   0x8   : > { %p134_p3 = scmp.eq.s32.totalorder %s1885_s20, 1  ;;  %p1886_p5 = scmp.ge.s32.totalorder %s2348_s18, 1 }
   0x9   : > { %p2414_p4 = por %p3978_p1, %p41_p0  ;;  %p141_p7 = scmp.lt.s32.totalorder %s2348_s18, 3 }
   0xa   : > { %p2419_p6 = por %p134_p3, %p41_p0  ;;  %s2350_s24 = smov [#allocation7]  }
   0xb   : > { %s4018_s21 = scalar_select %p2414_p4, 1, 0 }
   0xc   : > { %s4019_s22 = scalar_select %p2419_p6, 1, 0 }
   0xd   : > { %p2424_p8 = pnand %p1886_p5, %p141_p7  ;;  %s153_s25 = sshll.u32 %s2350_s24, 4  ;;  %s2428_s25 = int_to_ptr.vmem [resolvable:$true] %s153_s25 }
   0xe   : > { %s2351_s27 = smov [#allocation9]   ;;  %s2192_s5 = scalar_lea.hbm %s3974_s1, 256 }
   0xf   : > { %p2119_p9 = pneg %p2424_p8  ;;  %s166_s28 = sshll.u32 %s2351_s27, 4  ;;  %s2439_s28 = int_to_ptr.vmem [resolvable:$true] %s166_s28 }
  0x10   : > { %p2193_p12 = scmp.ne.s32.totalorder %s3974_s1, %s2192_s5  ;;  %p2199_p5 = scmp.lt.u32.totalorder %s2192_s5, %s3974_s1 }
  0x11   : > { %p2435_p11 = pnand %p2119_p9, %p3978_p1 }
  0x13   : > { %p2194_p13 = pneg %p2435_p11 }
  0x15   : > { %p2195_p0 = pnand %p2194_p13, %p2193_p12 }
  0x17   : > { %p2196_p3 = pneg %p2195_p0 }
  0x19   : > { %p2201_p7 = pnand %p2199_p5, %p2196_p3 }
  0x1b   : > { %2204 = shalt.err (!%p2201_p7)
}
  0x1c   : > { %s2205_s10 = scalar_lea.vmem %s2428_s25, 256  ;;  %p2213_p2 = scmp.lt.s32.totalorder %s2428_s25, %s2428_s25 }
  0x1d   : > { %p2206_p9 = scmp.ne.s32.totalorder %s2428_s25, %s2205_s10  ;;  %p2214_p12 = scmp.lt.s32.totalorder %s2205_s10, %s2205_s10 }
  0x1f   : > { %p2208_p10 = pnand %p2206_p9, %p2194_p13  ;;  %p2215_p0 = por %p2214_p12, %p2213_p2 }
  0x21   : > { %p2209_p1 = pneg %p2208_p10 }
  0x23   : > { %p2216_p6 = pnand %p2215_p0, %p2209_p1 }
  0x25   : > { %2219 = shalt.err (!%p2216_p6)
}
  0x26   : > { %s2352_s11 = smov 128   ;;  %s2353_s12 = smov 8  }
  0x27   : > { %2122 = dma.hbm_to_vmem [thread:$0]  (!%p2435_p11), %s3974_s1, 256, %s2428_s25, [#allocation8], %s2352_s11, %s2352_s11, %s2353_s12  }
  0x28   : > { %s2220_s27 = scalar_lea.hbm %s3975_s2, 2048 }
  0x29   : > { %p2221_p1 = scmp.ne.s32.totalorder %s3975_s2, %s2220_s27  ;;  %p2227_p10 = scmp.lt.u32.totalorder %s2220_s27, %s3975_s2 }
  0x2b   : > { %p2223_p2 = pnand %p2221_p1, %p2194_p13 }
  0x2d   : > { %p2224_p6 = pneg %p2223_p2 }
  0x2f   : > { %p2229_p3 = pnand %p2227_p10, %p2224_p6 }
  0x31   : > { %2232 = shalt.err (!%p2229_p3)
}
  0x32   : > { %s2233_s25 = scalar_lea.vmem %s2439_s28, 2048  ;;  %p2241_p12 = scmp.lt.s32.totalorder %s2439_s28, %s2439_s28 }
  0x33   : > { %p2234_p5 = scmp.ne.s32.totalorder %s2439_s28, %s2233_s25  ;;  %p2242_p0 = scmp.lt.s32.totalorder %s2233_s25, %s2233_s25 }
  0x35   : > { %p2236_p7 = pnand %p2234_p5, %p2194_p13  ;;  %p2243_p1 = por %p2242_p0, %p2241_p12 }
  0x37   : > { %p2237_p9 = pneg %p2236_p7 }
  0x39   : > { %p2244_p2 = pnand %p2243_p1, %p2237_p9 }
  0x3b   : > { %2247 = shalt.err (!%p2244_p2)
}
  0x3c   : > { %2125 = dma.hbm_to_vmem [thread:$0]  (!%p2435_p11), %s3975_s2, 2048, %s2439_s28, [#allocation8], %s2352_s11, %s2352_s11, %s2353_s12  }
  0x3d   : > { %s2500_s26 = sadd.s32 1, %s2348_s18   ;;  %s28_s9 = sadd.s32 1, %s2344_s17 }
  0x3e   : > { %s25_s10 = ssub.s32 %s2348_s18, %s2500_s26  ;;  %p35_p13 = scmp.ne.s32.totalorder %s2344_s17, %s2340_s16 }
  0x3f   : > { %p26_p6 = scmp.eq.s32.totalorder %s25_s10, 0  ;;  %p36_p10 = scmp.eq.s32.totalorder %s2348_s18, 0 }
  0x40   : > { %p4022_p3 = scmp.eq.s32.totalorder %s2405_s19, 1  ;;  %p2136_p7 = scmp.lt.s32.totalorder %s2348_s18, 2 }
  0x41   : > { %s2516_s14 = scalar_select %p26_p6, %s2344_s17, %s28_s9  }
  0x42   : > { %p2510_p5 = por %p4022_p3, %p35_p13  ;;  %p37_p9 = por %p36_p10, %p35_p13 }
  0x43   : > { %s183_s20 = sand.u32 1, %s2344_s17   ;;  %s1929_s28 = sshll.u32 %s2348_s18, 12 }
  0x44   : > { %s4023_s13 = scalar_select %p2510_p5, 1, 0 }
  0x45   : > { %s1890_s24 = sshll.u32 %s183_s20, 8  ;;  %s2523_s30 = scalar_lea.hbm %s3973_s0, %s1929_s28 }
  0x46   : > { %s187_s5 = scalar_lea.vmem [#allocation4], %s1890_s24  ;;  %p2527_p11 = pnand %p2136_p7, %p37_p9 }
  0x47   : > { %s194_s6 = sshll.u32 %s187_s5, 4  ;;  %s2531_s7 = scalar_lea.sflag [#allocation5], %s183_s20  ;;  %s2525_s6 = int_to_ptr.vmem [resolvable:$true] %s194_s6 }
  0x48   : > { %s2248_s8 = scalar_lea.hbm %s2523_s30, 4096  ;;  %p2250_p0 = pneg %p2527_p11 }
  0x49   : > { %p2249_p12 = scmp.ne.s32.totalorder %s2523_s30, %s2248_s8  ;;  %s2253_s24 = scalar_lea.hbm %s3973_s0, 8192 }
  0x4a   : > { %p2254_p13 = scmp.lt.u32.totalorder %s2523_s30, %s3973_s0  ;;  %p2255_p6 = scmp.lt.u32.totalorder %s2253_s24, %s2248_s8 }
  0x4b   : > { %p2251_p1 = pnand %p2250_p0, %p2249_p12  ;;  %p2257_p3 = scmp.lt.u32.totalorder %s2248_s8, %s2523_s30 }
  0x4c   : > { %p2256_p10 = por %p2255_p6, %p2254_p13 }
  0x4d   : > { %p2252_p2 = pneg %p2251_p1 }
  0x4e   : > { %p2258_p7 = por %p2257_p3, %p2256_p10 }
  0x50   : > { %p2259_p9 = pnand %p2258_p7, %p2252_p2 }
  0x52   : > { %2262 = shalt.err (!%p2259_p9)
}
  0x53   : > { %s2263_s20 = scalar_lea.vmem %s2525_s6, 4096  ;;  %s2354_s29 = smov [#allocation4]  }
  0x54   : > { %p2264_p12 = scmp.ne.s32.totalorder %s2525_s6, %s2263_s20  ;;  %s2268_s5 = sshll.u32 %s2354_s29, 4  ;;  %s2269_s5 = int_to_ptr.vmem [resolvable:$false] %s2268_s5 }
  0x55   : > { %s2270_s9 = scalar_lea.vmem %s2269_s5, 8192  ;;  %p2271_p4 = scmp.lt.s32.totalorder %s2525_s6, %s2269_s5 }
  0x56   : > { %p2266_p1 = pnand %p2264_p12, %p2250_p0  ;;  %p2272_p13 = scmp.lt.s32.totalorder %s2270_s9, %s2263_s20 }
  0x58   : > { %p2267_p5 = pneg %p2266_p1  ;;  %p2273_p6 = por %p2272_p13, %p2271_p4 }
  0x5a   : > { %p2274_p10 = pnand %p2273_p6, %p2267_p5 }
  0x5c   : > { %2277 = shalt.err (!%p2274_p10)
}
  0x5d   : > { %2129 = dma.hbm_to_vmem [thread:$0]  (!%p2527_p11), %s2523_s30, 4096, %s2525_s6, %s2531_s7, %s2352_s11, %s2352_s11, %s2353_s12  }
  0x5e   : > { %206 = sbr.rel (%p2424_p8) target bundleno = 547 (0x223), region = 36 }
  0x65   : > { %s2565_s8 = sand.u32 1, %s2340_s16   ;;  %p4025_p4 = scmp.ne.s32.totalorder %s4018_s21, 0 }
  0x66   : > { %s1894_s10 = sshll.u32 %s2565_s8, 8  ;;  %s209_s24 = scalar_lea.sflag [#allocation5], %s2565_s8 }
  0x67   : > { %s2571_s25 = scalar_lea.vmem [#allocation4], %s1894_s10 }
  0x68   : > { %2323 = dma.done.wait (%p4025_p4), %s209_s24, 4096  }
  0x69   : > { %2325 = vsyncadd (%p4025_p4), %s209_s24, 4294963200  ;;  %p4026_p5 = scmp.eq.s32.totalorder %s2405_s19, 0 }
  0x6b   : > { %2327 = dma.done.wait (%p4026_p5), [#allocation8], 2304   ;;  %p4027_p8 = pmov %p4026_p5 }
  0x6c   : > { %v255_v0 = vlaneseq  ;;  %v1307_v5 = vld [vmem:[#allocation9] sm:$0xff]  ;;  %v1308_v6 = vld [vmem:[#allocation9 + $0x8] sm:$0xff]  ;;  %v1309_v7 = vld [vmem:[#allocation9 + $0x10] sm:$0xff]  ;;  %v2355_v12 = vmov 0.0   ;;  %s3860_s11 = scalar_lea.vmem [#allocation10], %s1894_s10  ;;  %s1930_s12 = sshll.u32 %s2405_s19, 12 }
  0x6d   : > { %2329 = vsyncadd (%p4027_p8), [#allocation8], 4294964992  ;;  %v2059_v8 = vpack.c.bf16 %v1308_v6, %v1307_v5  ;;  %v1310_v9 = vld [vmem:[#allocation9 + $0x18] sm:$0xff]  ;;  %v1311_v10 = vld [vmem:[#allocation9 + $0x20] sm:$0xff]  ;;  %v2589_v13 = vrot.slane %v2355_v12, 7  ;;  %v2592_v18 = vrot.slane %v2355_v12, 1  ;;  %s3925_s28 = scalar_lea.hbm %s3977_s4, %s1930_s12 }
  0x6e   : > { %v2581_v1 = vshrl.u32 %v255_v0, 7  ;;  %v1312_v11 = vld [vmem:[#allocation9 + $0x28] sm:$0xff]  ;;  %v2063_v14 = vpack.c.bf16 %v1310_v9, %v1309_v7  ;;  %v1313_v15 = vld [vmem:[#allocation9 + $0x30] sm:$0xff]  ;;  %v1314_v16 = vld [vmem:[#allocation9 + $0x38] sm:$0xff]  ;;  %s1793_s30 = sshll.u32 %s3860_s11, 4  ;;  %s1780_s19 = scalar_lea.sflag [#allocation6], %s2565_s8  ;;  %s3927_s30 = int_to_ptr.vmem [resolvable:$true] %s1793_s30 }
  0x6f   : > { %4028 = vst [vmem:[#allocation14_spill] sm:$0xff] %v2589_v13  ;;  %v1315_v17 = vld [vmem:[#allocation9 + $0x40] sm:$0xff]  ;;  %4029 = vst [vmem:[#allocation15_spill] sm:$0xff] %v2592_v18  ;;  %2060 = vmatprep.subr.bf16.mxu0 %v2059_v8  ;;  %2091 = vmatprep.subr.bf16.mxu1 %v2059_v8  ;;  %v1316_v19 = vld [vmem:[#allocation9 + $0x48] sm:$0xff]  ;;  %v2067_v25 = vpack.c.bf16 %v1312_v11, %v1311_v10  ;;  %v2602_v29 = vpack.c.bf16 %v1314_v16, %v1313_v15  ;;  %s2278_s27 = scalar_lea.vmem %s3927_s30, 4096  ;;  %p4087_p0 = scmp.ne.s32.totalorder %s4023_s13, 0 }
  0x70   : > { %v257_v2 = vadd.s32 8, %v2581_v1  ;;  %v2585_v3 = vadd.s32 4294967295, %v2581_v1  ;;  %v1317_v20 = vld [vmem:[#allocation9 + $0x50] sm:$0xff]  ;;  %v1318_v21 = vld [vmem:[#allocation9 + $0x58] sm:$0xff]  ;;  %2062 = vmatpush3.bf16.msra.mxu0 %v2059_v8  ;;  %2099 = vmatpush3.bf16.msra.mxu1 %v2059_v8  ;;  %v1319_v22 = vld [vmem:[#allocation9 + $0x60] sm:$0xff]  ;;  %vm370_vm2 = vcmp.lt.s32.totalorder %v2581_v1, 1  ;;  %v2612_v32 = vpack.c.bf16 %v1316_v19, %v1315_v17  ;;  %p2279_p11 = scmp.ne.s32.totalorder %s3927_s30, %s2278_s27 }
  0x71   : > { %v1320_v23 = vld [vmem:[#allocation9 + $0x68] sm:$0xff]  ;;  %v1321_v24 = vld [vmem:[#allocation9 + $0x70] sm:$0xff]  ;;  %2064 = vmatprep.subr.bf16.mxu0 %v2063_v14  ;;  %2092 = vmatprep.subr.bf16.mxu1 %v2063_v14  ;;  %v1322_v26 = vld [vmem:[#allocation9 + $0x78] sm:$0xff]  ;;  %v2614_v33 = vpack.c.bf16 %v1318_v21, %v1317_v20  ;;  %vm523_vm3 = vcmp.lt.s32.totalorder %v2581_v1, 7  ;;  %s2356_s20 = smov [#allocation10]  }
  0x72   : > { %v2587_v4 = vadd.s32 1, %v257_v2  ;;  %vm260_vm0 = vcmp.ge.s32.totalorder %v2585_v3, 0  ;;  %v2595_v27 = vld [vmem:[#allocation7] ss:$0 sm:$0xff]  ;;  %v2604_v30 = vld [vmem:[#allocation7 + $0x2] ss:$0 sm:$0xff]  ;;  %v2616_v34 = vpack.c.bf16 %v1320_v23, %v1319_v22  ;;  %v2618_v35 = vpack.c.bf16 %v1322_v26, %v1321_v24  ;;  %p2280_p2 = pnand %p2279_p11, %p4087_p0 }
  0x73   : > { %v2600_v28 = vsel %vm260_vm0, %v2589_v13, 0.0  ;;  %v2620_v36 = vld [vmem:[#allocation7 + $0x1] ss:$0 sm:$0xff]  ;;  %v2622_v37 = vld [vmem:[#allocation7 + $0x4] ss:$0 sm:$0xff]  ;;  %v2630_v40 = vld [vmem:[%s2571_s25 + $0x8] sm:$0xff]  ;;  %v2636_v42 = vmul.f32 %v2595_v27, %v2589_v13  ;;  %v2641_v43 = vmul.f32 %v2604_v30, %v2592_v18 }
  0x74   : > { %vm271_vm1 = vcmp.lt.s32.totalorder %v2587_v4, 16  ;;  %4030 = vst [vmem:[#allocation16_spill] sm:$0xff] %v2600_v28  ;;  %2066 = vmatpush3.bf16.msra.mxu0 %v2063_v14  ;;  %2100 = vmatpush3.bf16.msra.mxu1 %v2063_v14  ;;  %v2624_v38 = vld [vmem:[#allocation7 + $0x3] ss:$0 sm:$0xff]  ;;  %v403_v41 = vmul.f32 %v2595_v27, %v2600_v28  ;;  %v2644_v44 = vld [vmem:[%s2571_s25 + $0x10] sm:$0xff]  ;;  %v2647_v45 = vld [vmem:[%s2571_s25 + $0x18] sm:$0xff]  ;;  %p2281_p3 = pneg %p2280_p2 }
  0x75   : > { %v2610_v31 = vsel %vm271_vm1, %v2592_v18, 0.0  ;;  %v2627_v39 = vld [vmem:[%s2571_s25] sm:$0xff]  ;;  %2068 = vmatprep.subr.bf16.mxu0 %v2067_v25  ;;  %2093 = vmatprep.subr.bf16.mxu1 %v2067_v25  ;;  %v365_v47 = vrot.slane %v2630_v40, 7  ;;  %v2653_v49 = vld [vmem:[%s2571_s25 + $0x70] sm:$0xff]  ;;  %v3993_v52 = vrot.slane %v2644_v44, 7  ;;  %v366_v53 = vrot.slane %v2647_v45, 7 }
  0x76   : > { %4031 = vst [vmem:[#allocation17_spill] sm:$0xff] %v2610_v31  ;;  %v359_v46 = vrot.slane %v2627_v39, 7  ;;  %v3990_v48 = vrot.slane %v2627_v39, 1  ;;  %v2657_v50 = vmul.f32 %v2604_v30, %v2610_v31  ;;  %v2659_v51 = vld [vmem:[#allocation7 + $0x7] ss:$0 sm:$0xff]  ;;  %v2664_v54 = vmul.f32 0.0, %v2620_v36 }
  0x77   : > { %v475_v55 = vmul.f32 %v2622_v37, %v2627_v39  ;;  %v2669_v56 = vld [vmem:[%s2571_s25 + $0x78] sm:$0xff]  ;;  %v2671_v57 = vld [vmem:[#allocation7 + $0x6] ss:$0 sm:$0xff]  ;;  %v3986_v59 = vrot.slane %v2644_v44, 1  ;;  %v3987_v60 = vrot.slane %v2630_v40, 1  ;;  %v3983_v61 = vrot.slane %v2647_v45, 1 }
  0x78   : > { %v378_v58 = vsel %vm370_vm2, %v365_v47, %v359_v46  ;;  %v2683_v62 = vld [vmem:[%s2571_s25 + $0x80] sm:$0xff]  ;;  %2070 = vmatpush3.bf16.msra.mxu0 %v2067_v25  ;;  %2101 = vmatpush3.bf16.msra.mxu1 %v2067_v25  ;;  %v379_v63 = vsel %vm370_vm2, %v366_v53, %v3993_v52  ;;  %v3981_v2 = vrot.slane %v2653_v49, 7  ;;  %v3982_v5 = vrot.slane %v2669_v56, 7  ;;  %v2711_v11 = vld [vmem:[%s2571_s25 + $0x88] sm:$0xff]  ;;  %v2734_v22 = vld [vmem:[%s2571_s25 + $0x90] sm:$0xff]  ;;  %s2282_s29 = sshll.u32 %s2356_s20, 4  ;;  %s2283_s29 = int_to_ptr.vmem [resolvable:$false] %s2282_s29 }
  0x79   : > { %v389_v0 = vsel %vm260_vm0, %v378_v58, 0.0  ;;  %2072 = vmatprep.subr.bf16.mxu0 %v2602_v29  ;;  %2094 = vmatprep.subr.bf16.mxu1 %v2602_v29  ;;  %v2697_v6 = vld [vmem:[#allocation7 + $0x5] ss:$0 sm:$0xff]  ;;  %v391_v7 = vsel %vm260_vm0, %v379_v63, 0.0  ;;  %v495_v9 = vmul.f32 %v2659_v51, %v2644_v44  ;;  %v525_v10 = vsel %vm523_vm3, %v3990_v48, %v3987_v60  ;;  %v2743_v25 = vld [vmem:[%s2571_s25 + $0x98] sm:$0xff]  ;;  %s2284_s5 = scalar_lea.vmem %s2283_s29, 8192  ;;  %p2285_p7 = scmp.lt.s32.totalorder %s3927_s30, %s2283_s29 }
  0x7a   : > { %v415_v8 = vmul.f32 %v2624_v38, %v389_v0  ;;  %v2714_v12 = vmul.f32 %v2595_v27, %v389_v0  ;;  %v2717_v14 = vmul.f32 %v2595_v27, %v391_v7  ;;  %v435_v15 = vmul.f32 %v2671_v57, %v391_v7  ;;  %p2286_p9 = scmp.lt.s32.totalorder %s2284_s5, %s2278_s27 }
  0x7b   : > { %v3984_v16 = vrot.slane %v2683_v62, 7  ;;  %v2722_v17 = vmul.f32 %v2624_v38, %v391_v7  ;;  %v526_v20 = vsel %vm523_vm3, %v3986_v59, %v3983_v61  ;;  %v2731_v21 = vmul.f32 %v2604_v30, %v525_v10 }
  0x7c   : > { %v423_v19 = vadd.f32 %v415_v8, %v403_v41  ;;  %2074 = vmatpush3.bf16.msra.mxu0 %v2602_v29  ;;  %2102 = vmatpush3.bf16.msra.mxu1 %v2602_v29  ;;  %v2739_v23 = vmul.f32 %v2604_v30, %v526_v20  ;;  %v576_v24 = vmul.f32 %v2697_v6, %v525_v10  ;;  %v3985_v26 = vrot.slane %v2711_v11, 7  ;;  %v2754_v29 = vld [vmem:[#allocation7 + $0x8] ss:$0 sm:$0xff]  ;;  %p2287_p12 = por %p2286_p9, %p2285_p7 }
  0x7d   : > { %v655_v41 = vsel %vm370_vm2, %v3982_v5, %v3981_v2  ;;  %2076 = vmatprep.subr.bf16.mxu0 %v2612_v32  ;;  %2095 = vmatprep.subr.bf16.mxu1 %v2612_v32  ;;  %v3989_v0 = vrot.slane %v2653_v49, 1  ;;  %v3997_v7 = vrot.slane %v2683_v62, 1  ;;  %v3988_v10 = vrot.slane %v2669_v56, 1 }
  0x7e   : > { %4032 = vst [vmem:[#allocation18_spill] sm:$0xff] %v2739_v23  ;;  %v443_v58 = vadd.f32 %v435_v15, %v423_v19  ;;  %v2758_v63 = vsel %vm260_vm0, %v655_v41, 0.0  ;;  %v656_v8 = vsel %vm370_vm2, %v3985_v26, %v3984_v16  ;;  %v3994_v2 = vrot.slane %v2711_v11, 1  ;;  %p2288_p1 = pnand %p2287_p12, %p2281_p3 }
  0x7f   : > { %4033 = vst [vmem:[#allocation19_spill] sm:$0xff] %v2758_v63  ;;  %v3991_v15 = vrot.slane %v2734_v22, 7  ;;  %v2774_v41 = vsel %vm260_vm0, %v656_v8, 0.0  ;;  %v3992_v5 = vrot.slane %v2743_v25, 7  ;;  %v898_v61 = vmul.f32 %v2595_v27, %v2758_v63 }
  0x80   : > { %v463_v19 = vadd.f32 %v2664_v54, %v443_v58  ;;  %4034 = vst [vmem:[#allocation20_spill] sm:$0xff] %v2774_v41  ;;  %2078 = vmatpush3.bf16.msra.mxu0 %v2612_v32  ;;  %2103 = vmatpush3.bf16.msra.mxu1 %v2612_v32  ;;  %v2782_v16 = vmul.f32 %v2697_v6, %v526_v20  ;;  %v3996_v8 = vrot.slane %v2734_v22, 1  ;;  %v3995_v60 = vrot.slane %v2743_v25, 1 }
  0x81   : > { %v596_v26 = vmul.f32 %v2754_v29, %v526_v20  ;;  %v906_v58 = vmul.f32 %v2624_v38, %v2774_v41  ;;  %2080 = vmatprep.subr.bf16.mxu0 %v2614_v33  ;;  %2096 = vmatprep.subr.bf16.mxu1 %v2614_v33  ;;  %v2796_v32 = vsel %vm523_vm3, %v3989_v0, %v3988_v10  ;;  %v4042_v13 = vrot.slane %v2647_v45, 1 }
  0x82   : > { %v483_v59 = vadd.f32 %v475_v55, %v463_v19  ;;  %4035 = vst [vmem:[#allocation21_spill] sm:$0xff] %v2796_v32  ;;  %v882_v20 = vsel %vm370_vm2, %v3992_v5, %v3991_v15  ;;  %v2811_v55 = vsel %vm523_vm3, %v3997_v7, %v3994_v2  ;;  %v938_v0 = vmul.f32 %v2620_v36, %v2653_v49 }
  0x83   : > { %4036 = vst [vmem:[#allocation22_spill] sm:$0xff] %v2811_v55  ;;  %v890_v19 = vsel %vm260_vm0, %v882_v20, 0.0  ;;  %v914_v10 = vadd.f32 %v906_v58, %v898_v61  ;;  %v954_v5 = vmul.f32 %v2622_v37, %v2683_v62  ;;  %v970_v52 = vmul.f32 %v2659_v51, %v2734_v22 }
  0x84   : > { %v503_v48 = vadd.f32 %v495_v9, %v483_v59  ;;  %v922_v15 = vmul.f32 %v2671_v57, %v890_v19  ;;  %2082 = vmatpush3.bf16.msra.mxu0 %v2614_v33  ;;  %2104 = vmatpush3.bf16.msra.mxu1 %v2614_v33  ;;  %v2825_v61 = vmul.f32 %v2595_v27, %v890_v19  ;;  %v4038_v7 = vrot.slane %v2644_v44, 7 }
  0x85   : > { %v2828_v58 = vmul.f32 %v2624_v38, %v890_v19  ;;  %v2836_v59 = vsel %vm523_vm3, %v3996_v8, %v3995_v60  ;;  %2084 = vmatprep.subr.bf16.mxu0 %v2616_v34  ;;  %2097 = vmatprep.subr.bf16.mxu1 %v2616_v34  ;;  %v1022_v20 = vmul.f32 %v2604_v30, %v2796_v32  ;;  %v2844_v19 = vld [vmem:[%s2571_s25 + $0x20] sm:$0xff]  ;;  %v4057_v63 = vrot.slane %v2743_v25, 1 }
  0x86   : > { %v564_v33 = vadd.f32 %v2641_v43, %v503_v48  ;;  %v930_v9 = vadd.f32 %v922_v15, %v914_v10  ;;  %v2848_v2 = vmul.f32 %v2604_v30, %v2811_v55  ;;  %v2852_v60 = vmul.f32 %v2604_v30, %v2836_v59  ;;  %v2865_v48 = vld [vmem:[%s2571_s25 + $0x28] sm:$0xff] }
  0x87   : > { %v1038_v8 = vmul.f32 %v2697_v6, %v2811_v55  ;;  %v2862_v43 = vsel %vm370_vm2, %v359_v46, %v365_v47  ;;  %v2873_v31 = vsel %vm370_vm2, %v4038_v7, %v366_v53  ;;  %v1054_v46 = vmul.f32 %v2754_v29, %v2836_v59 }
  0x88   : > { %4037 = vst [vmem:[#allocation23_spill] sm:$0xff] %v2852_v60  ;;  %v584_v10 = vadd.f32 %v576_v24, %v564_v33  ;;  %v946_v15 = vadd.f32 %v938_v0, %v930_v9  ;;  %v416_v18 = vmul.f32 %v2624_v38, %v2862_v43  ;;  %2086 = vmatpush3.bf16.msra.mxu0 %v2616_v34  ;;  %v4039_v9 = vrot.slane %v2627_v39, 1 }
  0x89   : > { %2105 = vmatpush3.bf16.msra.mxu1 %v2616_v34  ;;  %v436_v47 = vmul.f32 %v2671_v57, %v2873_v31  ;;  %v476_v24 = vmul.f32 %v2622_v37, %v2630_v40  ;;  %2088 = vmatprep.subr.bf16.mxu0 %v2618_v35  ;;  %v4040_v55 = vrot.slane %v2630_v40, 1  ;;  %v4041_v0 = vrot.slane %v2644_v44, 1 }
  0x8a   : > { %2098 = vmatprep.subr.bf16.mxu1 %v2618_v35  ;;  %v604_v53 = vadd.f32 %v596_v26, %v584_v10  ;;  %v962_v7 = vadd.f32 %v954_v5, %v946_v15  ;;  %v424_v33 = vadd.f32 %v416_v18, %v2636_v42  ;;  %v4043_v5 = vrot.slane %v2669_v56, 7 }
  0x8b   : > { %v531_v28 = vsel %vm523_vm3, %v4040_v55, %v4039_v9  ;;  %v532_v26 = vsel %vm523_vm3, %v4042_v13, %v4041_v0  ;;  %v4044_v18 = vrot.slane %v2653_v49, 7  ;;  %v4046_v10 = vrot.slane %v2711_v11, 7 }
  0x8c   : > { %v4047_v15 = vrot.slane %v2683_v62, 7  ;;  %2011 = vmatprep.mubr.f32.mxu0 %v604_v53  ;;  %v978_v9 = vadd.f32 %v970_v52, %v962_v7  ;;  %v444_v34 = vadd.f32 %v436_v47, %v424_v33  ;;  %v2920_v13 = vsel %vm271_vm1, %v531_v28, 0.0  ;;  %2090 = vmatpush3.bf16.msra.mxu0 %v2618_v35  ;;  %v2935_v28 = vld [vmem:[%s2571_s25 + $0xa0] sm:$0xff] }
  0x8d   : > { %v2908_v42 = vsel %vm370_vm2, %v4044_v18, %v4043_v5  ;;  %v2924_v0 = vsel %vm271_vm1, %v532_v26, 0.0  ;;  %2106 = vmatpush3.bf16.msra.mxu1 %v2618_v35  ;;  %v496_v5 = vmul.f32 %v2659_v51, %v2647_v45  ;;  %v577_v53 = vmul.f32 %v2697_v6, %v2920_v13 }
  0x8e   : > { %4045 = vst [vmem:[#allocation24_spill] sm:$0xff] %v2908_v42  ;;  %v2916_v55 = vsel %vm370_vm2, %v4047_v15, %v4046_v10  ;;  %v1030_v7 = vadd.f32 %v1022_v20, %v978_v9  ;;  %v464_v33 = vadd.f32 %v2664_v54, %v444_v34  ;;  %v597_v26 = vmul.f32 %v2754_v29, %v2924_v0 }
  0x8f   : > { %4048 = vst [vmem:[#allocation25_spill] sm:$0xff] %v2916_v55  ;;  %v4049_v35 = vrot.slane %v2653_v49, 1  ;;  %v4050_v18 = vrot.slane %v2669_v56, 1  ;;  %v4051_v15 = vrot.slane %v2683_v62, 1  ;;  %v4052_v52 = vrot.slane %v2711_v11, 1 }
  0x90   : > { %v4053_v20 = vrot.slane %v2743_v25, 7  ;;  %v4054_v54 = vrot.slane %v2734_v22, 7  ;;  %v899_v49 = vmul.f32 %v2595_v27, %v2908_v42  ;;  %v907_v9 = vmul.f32 %v2624_v38, %v2916_v55 }
  0x91   : > { %v779_v10 = vsel %vm523_vm3, %v4050_v18, %v4049_v35  ;;  %v780_v47 = vsel %vm523_vm3, %v4052_v52, %v4051_v15  ;;  %v1046_v35 = vadd.f32 %v1038_v8, %v1030_v7  ;;  %v484_v18 = vadd.f32 %v476_v24, %v464_v33 }
  0x92   : > { %v2958_v34 = vsel %vm370_vm2, %v4054_v54, %v4053_v20  ;;  %v2969_v32 = vsel %vm271_vm1, %v779_v10, 0.0  ;;  %v915_v20 = vadd.f32 %v907_v9, %v899_v49  ;;  %v939_v54 = vmul.f32 %v2620_v36, %v2669_v56 }
  0x93   : > { %v923_v52 = vmul.f32 %v2671_v57, %v2958_v34  ;;  %4055 = vst [vmem:[#allocation26_spill] sm:$0xff] %v2969_v32  ;;  %v4056_v42 = vrot.slane %v2734_v22, 1  ;;  %v1062_v24 = vadd.f32 %v1054_v46, %v1046_v35  ;;  %v504_v7 = vadd.f32 %v496_v5, %v484_v18 }
  0x94   : > { %v2981_v33 = vsel %vm271_vm1, %v780_v47, 0.0  ;;  %v955_v10 = vmul.f32 %v2622_v37, %v2711_v11  ;;  %v971_v56 = vmul.f32 %v2659_v51, %v2743_v25  ;;  %v4059_v15 = vrot.slane %v2844_v19, 7 }
  0x95   : > { %v1006_v8 = vsel %vm523_vm3, %v4057_v63, %v4056_v42  ;;  %4058 = vst [vmem:[#allocation27_spill] sm:$0xff] %v2981_v33  ;;  %v931_v49 = vadd.f32 %v923_v52, %v915_v20  ;;  %v4060_v63 = vrot.slane %v2865_v48, 7  ;;  %v2998_v42 = vld [vmem:[%s2571_s25 + $0xa8] sm:$0xff]  ;;  %2035 = vmatprep.mubr.f32.mxu1 %v1062_v24  ;;  %v565_v5 = vadd.f32 %v2657_v50, %v504_v7 }
  0x96   : > { %v2989_v9 = vsel %vm271_vm1, %v1006_v8, 0.0  ;;  %v1023_v47 = vmul.f32 %v2604_v30, %v2969_v32  ;;  %v425_v18 = vadd.f32 %v2722_v17, %v2714_v12  ;;  %v1039_v20 = vmul.f32 %v2697_v6, %v2981_v33 }
  0x97   : > { %v380_v46 = vsel %vm370_vm2, %v4060_v63, %v4059_v15  ;;  %v947_v52 = vadd.f32 %v939_v54, %v931_v49  ;;  %v457_v50 = vmul.f32 %v2620_v36, %v2627_v39  ;;  %v585_v8 = vadd.f32 %v577_v53, %v565_v5 }
  0x98   : > { %v3005_v35 = vsel %vm260_vm0, %v380_v46, 0.0  ;;  %v1055_v24 = vmul.f32 %v2754_v29, %v2989_v9  ;;  %v871_v7 = vrot.slane %v2998_v42, 7  ;;  %v900_v63 = vmul.f32 %v2595_v27, %v2774_v41 }
  0x99   : > { %v437_v15 = vmul.f32 %v2671_v57, %v3005_v35  ;;  %v963_v12 = vadd.f32 %v955_v10, %v947_v52  ;;  %v477_v54 = vmul.f32 %v2622_v37, %v2644_v44  ;;  %v497_v49 = vmul.f32 %v2659_v51, %v2844_v19 }
  0x9a   : > { %v605_v46 = vadd.f32 %v597_v26, %v585_v8  ;;  %v4061_v39 = vrot.slane %v2865_v48, 1  ;;  %v4062_v53 = vrot.slane %v2844_v19, 1  ;;  %v4063_v32 = vrot.slane %v2935_v28, 7 }
  0x9b   : > { %v445_v17 = vadd.f32 %v437_v15, %v425_v18  ;;  %v916_v18 = vadd.f32 %v2828_v58, %v900_v63  ;;  %v979_v52 = vadd.f32 %v971_v56, %v963_v12  ;;  %v940_v8 = vmul.f32 %v2620_v36, %v2683_v62 }
  0x9c   : > { %v3030_v5 = vsel %vm523_vm3, %v4062_v53, %v4061_v39  ;;  %v883_v10 = vsel %vm370_vm2, %v871_v7, %v4063_v32  ;;  %2012 = vmatmul.mubr.f32.vlgmr.msra.gmra.mrb[0].mxu0 %v605_v46  ;;  %v989_v53 = vrot.slane %v2935_v28, 1  ;;  %v995_v41 = vrot.slane %v2998_v42, 1 }
  0x9d   : > { %v465_v15 = vadd.f32 %v457_v50, %v445_v17  ;;  %v3039_v26 = vsel %vm260_vm0, %v883_v10, 0.0  ;;  %v4064_v32 = vrot.slane %v2865_v48, 7  ;;  %v4065_v58 = vrot.slane %v2844_v19, 7 }
  0x9e   : > { %v924_v39 = vmul.f32 %v2671_v57, %v3039_v26  ;;  %v1031_v50 = vadd.f32 %v1023_v47, %v979_v52  ;;  %v406_v62 = vmul.f32 %v2595_v27, %v2862_v43  ;;  %v418_v12 = vmul.f32 %v2624_v38, %v2873_v31 }
  0x9f   : > { %v3053_v56 = vsel %vm370_vm2, %v4065_v58, %v4064_v32  ;;  %v485_v63 = vadd.f32 %v477_v54, %v465_v15  ;;  %v956_v46 = vmul.f32 %v2622_v37, %v2734_v22  ;;  %v3063_v10 = vsel %vm523_vm3, %v989_v53, %v995_v41 }
  0xa0   : > { %v932_v17 = vadd.f32 %v924_v39, %v916_v18  ;;  %v438_v32 = vmul.f32 %v2671_v57, %v3053_v56  ;;  %v1047_v58 = vadd.f32 %v1039_v20, %v1031_v50  ;;  %v426_v54 = vadd.f32 %v418_v12, %v406_v62 }
  0xa1   : > { %v505_v47 = vadd.f32 %v497_v49, %v485_v63  ;;  %v458_v43 = vmul.f32 %v2620_v36, %v2630_v40  ;;  %v598_v52 = vmul.f32 %v2754_v29, %v3030_v5  ;;  %v972_v15 = vmul.f32 %v2659_v51, %v2935_v28 }
  0xa2   : > { %v948_v18 = vadd.f32 %v940_v8, %v932_v17  ;;  %v478_v39 = vmul.f32 %v2622_v37, %v2647_v45  ;;  %v1063_v60 = vadd.f32 %v1055_v24, %v1047_v58  ;;  %v446_v20 = vadd.f32 %v438_v32, %v426_v54 }
  0xa3   : > { %v566_v23 = vadd.f32 %v2731_v21, %v505_v47  ;;  %v4066_v49 = vrot.slane %v2844_v19, 1  ;;  %v4067_v50 = vrot.slane %v2865_v48, 1  ;;  %v1040_v8 = vmul.f32 %v2697_v6, %v2836_v59 }
  0xa4   : > { %v964_v63 = vadd.f32 %v956_v46, %v948_v18  ;;  %v1056_v62 = vmul.f32 %v2754_v29, %v3063_v10  ;;  %v498_v21 = vmul.f32 %v2659_v51, %v2865_v48  ;;  %2036 = vmatmul.mubr.f32.vlgmr.msra.gmra.mrb[0].mxu1 %v1063_v60  ;;  %v466_v12 = vadd.f32 %v458_v43, %v446_v20  ;;  %v3113_v18 = vld [vmem:[%s2571_s25 + $0x38] sm:$0xff] }
  0xa5   : > { %v533_v40 = vsel %vm523_vm3, %v4067_v50, %v4066_v49  ;;  %v586_v24 = vadd.f32 %v2782_v16, %v566_v23  ;;  %v4068_v17 = vrot.slane %v2935_v28, 7  ;;  %v901_v59 = vmul.f32 %v2595_v27, %v2916_v55  ;;  %v3106_v23 = vld [vmem:[%s2571_s25 + $0x30] sm:$0xff] }
  0xa6   : > { %v980_v46 = vadd.f32 %v972_v15, %v964_v63  ;;  %v3099_v58 = vsel %vm271_vm1, %v533_v40, 0.0  ;;  %v909_v60 = vmul.f32 %v2624_v38, %v2958_v34  ;;  %v486_v54 = vadd.f32 %v478_v39, %v466_v12 }
  0xa7   : > { %v3093_v32 = vsel %vm370_vm2, %v4068_v17, %v871_v7  ;;  %v606_v47 = vadd.f32 %v598_v52, %v586_v24  ;;  %v559_v7 = vmul.f32 %v2604_v30, %v2920_v13  ;;  %v579_v43 = vmul.f32 %v2697_v6, %v2924_v0 }
  0xa8   : > { %v925_v16 = vmul.f32 %v2671_v57, %v3093_v32  ;;  %v1032_v15 = vadd.f32 %v2848_v2, %v980_v46  ;;  %v917_v20 = vadd.f32 %v909_v60, %v901_v59  ;;  %v941_v49 = vmul.f32 %v2620_v36, %v2711_v11  ;;  %v3141_v60 = vld [vmem:[%s2571_s25 + $0xb0] sm:$0xff] }
  0xa9   : > { %v1007_v50 = vsel %vm523_vm3, %v995_v41, %v989_v53  ;;  %2014 = vmatprep.mubr.f32.mxu0 %v606_v47  ;;  %v506_v52 = vadd.f32 %v498_v21, %v486_v54  ;;  %v599_v13 = vmul.f32 %v2754_v29, %v3099_v58  ;;  %v957_v39 = vmul.f32 %v2622_v37, %v2743_v25 }
  0xaa   : > { %v362_v40 = vrot.slane %v3106_v23, 7  ;;  %v1048_v2 = vadd.f32 %v1040_v8, %v1032_v15  ;;  %v933_v63 = vadd.f32 %v925_v16, %v917_v20  ;;  %v973_v11 = vmul.f32 %v2659_v51, %v2998_v42  ;;  %v3144_v16 = vld [vmem:[%s2571_s25 + $0xb8] sm:$0xff] }
  0xab   : > { %v368_v24 = vrot.slane %v3113_v18, 7  ;;  %v567_v41 = vadd.f32 %v559_v7, %v506_v52  ;;  %v3130_v53 = vsel %vm271_vm1, %v1007_v50, 0.0  ;;  %v1025_v21 = vmul.f32 %v2604_v30, %v2981_v33 }
  0xac   : > { %v419_v12 = vmul.f32 %v2624_v38, %v3005_v35  ;;  %v1064_v17 = vadd.f32 %v1056_v62, %v1048_v2  ;;  %v949_v59 = vadd.f32 %v941_v49, %v933_v63  ;;  %v1041_v8 = vmul.f32 %v2697_v6, %v2989_v9 }
  0xad   : > { %v381_v46 = vsel %vm370_vm2, %v368_v24, %v362_v40  ;;  %v587_v47 = vadd.f32 %v579_v43, %v567_v41  ;;  %v515_v62 = vrot.slane %v3106_v23, 1  ;;  %v459_v49 = vmul.f32 %v2620_v36, %v2644_v44 }
  0xae   : > { %v3148_v54 = vsel %vm260_vm0, %v381_v46, 0.0  ;;  %v427_v7 = vadd.f32 %v419_v12, %v2717_v14  ;;  %2038 = vmatprep.mubr.f32.mxu1 %v1064_v17  ;;  %v965_v15 = vadd.f32 %v957_v39, %v949_v59  ;;  %v521_v50 = vrot.slane %v3113_v18, 1 }
  0xaf   : > { %v439_v20 = vmul.f32 %v2671_v57, %v3148_v54  ;;  %v607_v52 = vadd.f32 %v599_v13, %v587_v47  ;;  %v866_v43 = vrot.slane %v3141_v60, 7  ;;  %v872_v2 = vrot.slane %v3144_v16, 7 }
  0xb0   : > { %v910_v14 = vmul.f32 %v2624_v38, %v3039_v26  ;;  %v981_v63 = vadd.f32 %v973_v11, %v965_v15  ;;  %v1057_v39 = vmul.f32 %v2754_v29, %v3130_v53  ;;  %v479_v12 = vmul.f32 %v2622_v37, %v2844_v19 }
  0xb1   : > { %v447_v41 = vadd.f32 %v439_v20, %v427_v7  ;;  %2015 = vmatmul.mubr.f32.gmra.mrb[2].mxu0 %v607_v52  ;;  %v499_v44 = vmul.f32 %v2659_v51, %v3106_v23  ;;  %v3169_v13 = vsel %vm523_vm3, %v515_v62, %v521_v50  ;;  %v884_v17 = vsel %vm370_vm2, %v872_v2, %v866_v43 }
  0xb2   : > { %v918_v11 = vadd.f32 %v910_v14, %v2825_v61  ;;  %v1033_v59 = vadd.f32 %v1025_v21, %v981_v63  ;;  %v3176_v47 = vsel %vm260_vm0, %v884_v17, 0.0  ;;  %v942_v7 = vmul.f32 %v2620_v36, %v2734_v22 }
  0xb3   : > { %v467_v46 = vadd.f32 %v459_v49, %v447_v41  ;;  %v926_v15 = vmul.f32 %v2671_v57, %v3176_v47  ;;  %v958_v20 = vmul.f32 %v2622_v37, %v2935_v28  ;;  %v990_v52 = vrot.slane %v3141_v60, 1 }
  0xb4   : > { %v996_v33 = vrot.slane %v3144_v16, 1  ;;  %v1049_v61 = vadd.f32 %v1041_v8, %v1033_v59  ;;  %v3188_v49 = vsel %vm370_vm2, %v362_v40, %v368_v24  ;;  %v408_v14 = vmul.f32 %v2595_v27, %v2873_v31 }
  0xb5   : > { %v487_v21 = vadd.f32 %v479_v12, %v467_v46  ;;  %v934_v22 = vadd.f32 %v926_v15, %v918_v11  ;;  %v420_v41 = vmul.f32 %v2624_v38, %v3053_v56  ;;  %v440_v17 = vmul.f32 %v2671_v57, %v3188_v49  ;;  %v4069_v15 = vld [vmem:[#allocation18_spill] sm:$0xff] }
  0xb6   : > { %v3194_v63 = vsel %vm523_vm3, %v990_v52, %v996_v33  ;;  %v1065_v8 = vadd.f32 %v1057_v39, %v1049_v61  ;;  %v580_v40 = vmul.f32 %v2697_v6, %v3030_v5  ;;  %v600_v24 = vmul.f32 %v2754_v29, %v3169_v13 }
  0xb7   : > { %v507_v12 = vadd.f32 %v499_v44, %v487_v21  ;;  %v950_v31 = vadd.f32 %v942_v7, %v934_v22  ;;  %v974_v11 = vmul.f32 %v2659_v51, %v3141_v60  ;;  %v428_v59 = vadd.f32 %v420_v41, %v408_v14 }
  0xb8   : > { %v460_v46 = vmul.f32 %v2620_v36, %v2647_v45  ;;  %2039 = vmatmul.mubr.f32.gmra.mrb[2].mxu1 %v1065_v8  ;;  %v1042_v39 = vmul.f32 %v2697_v6, %v3063_v10  ;;  %v1058_v44 = vmul.f32 %v2754_v29, %v3194_v63  ;;  %v534_v7 = vsel %vm523_vm3, %v521_v50, %v515_v62 }
  0xb9   : > { %v568_v55 = vadd.f32 %v4069_v15, %v507_v12  ;;  %v966_v61 = vadd.f32 %v958_v20, %v950_v31  ;;  %v448_v21 = vadd.f32 %v440_v17, %v428_v59  ;;  %v480_v14 = vmul.f32 %v2622_v37, %v2865_v48  ;;  %v3241_v31 = vld [vmem:[%s2571_s25 + $0x48] sm:$0xff] }
  0xba   : > { %v3219_v45 = vsel %vm370_vm2, %v866_v43, %v872_v2  ;;  %v3223_v41 = vsel %vm271_vm1, %v534_v7, 0.0  ;;  %v903_v8 = vmul.f32 %v2595_v27, %v2958_v34  ;;  %v911_v62 = vmul.f32 %v2624_v38, %v3093_v32  ;;  %v3234_v2 = vld [vmem:[%s2571_s25 + $0x40] sm:$0xff] }
  0xbb   : > { %v588_v22 = vadd.f32 %v580_v40, %v568_v55  ;;  %v982_v50 = vadd.f32 %v974_v11, %v966_v61  ;;  %v468_v20 = vadd.f32 %v460_v46, %v448_v21  ;;  %v500_v17 = vmul.f32 %v2659_v51, %v3113_v18  ;;  %v4070_v11 = vld [vmem:[#allocation23_spill] sm:$0xff] }
  0xbc   : > { %v927_v43 = vmul.f32 %v2671_v57, %v3219_v45  ;;  %v561_v12 = vmul.f32 %v2604_v30, %v2924_v0  ;;  %v919_v40 = vadd.f32 %v911_v62, %v903_v8  ;;  %v943_v34 = vmul.f32 %v2620_v36, %v2743_v25 }
  0xbd   : > { %v608_v55 = vadd.f32 %v600_v24, %v588_v22  ;;  %v1034_v59 = vadd.f32 %v4070_v11, %v982_v50  ;;  %v488_v46 = vadd.f32 %v480_v14, %v468_v20  ;;  %v581_v15 = vmul.f32 %v2697_v6, %v3099_v58 }
  0xbe   : > { %v601_v7 = vmul.f32 %v2754_v29, %v3223_v41  ;;  %v935_v24 = vadd.f32 %v927_v43, %v919_v40  ;;  %v959_v0 = vmul.f32 %v2622_v37, %v2998_v42  ;;  %v1008_v25 = vsel %vm523_vm3, %v996_v33, %v990_v52 }
  0xbf   : > { %2017 = vmatprep.mubr.f32.mxu0 %v608_v55  ;;  %v363_v61 = vrot.slane %v3234_v2, 7  ;;  %v1050_v21 = vadd.f32 %v1042_v39, %v1034_v59  ;;  %v508_v22 = vadd.f32 %v500_v17, %v488_v46  ;;  %v975_v14 = vmul.f32 %v2659_v51, %v3144_v16  ;;  %v3269_v55 = vld [vmem:[%s2571_s25 + $0xc0] sm:$0xff] }
  0xc0   : > { %v369_v8 = vrot.slane %v3241_v31, 7  ;;  %v951_v62 = vadd.f32 %v943_v34, %v935_v24  ;;  %v1027_v50 = vmul.f32 %v2604_v30, %v2989_v9  ;;  %v409_v20 = vmul.f32 %v2595_v27, %v3005_v35 }
  0xc1   : > { %v421_v33 = vmul.f32 %v2624_v38, %v3148_v54  ;;  %v1066_v52 = vadd.f32 %v1058_v44, %v1050_v21  ;;  %v569_v43 = vadd.f32 %v561_v12, %v508_v22  ;;  %v3264_v39 = vsel %vm271_vm1, %v1008_v25, 0.0  ;;  %v3278_v44 = vld [vmem:[%s2571_s25 + $0xc8] sm:$0xff] }
  0xc2   : > { %v382_v17 = vsel %vm370_vm2, %v369_v8, %v363_v61  ;;  %v967_v40 = vadd.f32 %v959_v0, %v951_v62  ;;  %v461_v34 = vmul.f32 %v2620_v36, %v2844_v19  ;;  %v516_v59 = vrot.slane %v3234_v2, 1 }
  0xc3   : > { %v3273_v9 = vsel %vm260_vm0, %v382_v17, 0.0  ;;  %v429_v35 = vadd.f32 %v421_v33, %v409_v20  ;;  %2041 = vmatprep.mubr.f32.mxu1 %v1066_v52  ;;  %v589_v12 = vadd.f32 %v581_v15, %v569_v43  ;;  %v522_v46 = vrot.slane %v3241_v31, 1 }
  0xc4   : > { %v441_v11 = vmul.f32 %v2671_v57, %v3273_v9  ;;  %v983_v24 = vadd.f32 %v975_v14, %v967_v40  ;;  %v1043_v0 = vmul.f32 %v2697_v6, %v3130_v53  ;;  %v1059_v25 = vmul.f32 %v2754_v29, %v3264_v39 }
  0xc5   : > { %v867_v19 = vrot.slane %v3269_v55, 7  ;;  %v609_v21 = vadd.f32 %v601_v7, %v589_v12  ;;  %v481_v15 = vmul.f32 %v2622_v37, %v3106_v23  ;;  %v873_v62 = vrot.slane %v3278_v44, 7 }
  0xc6   : > { %v449_v22 = vadd.f32 %v441_v11, %v429_v35  ;;  %v1035_v20 = vadd.f32 %v1027_v50, %v983_v24  ;;  %v501_v33 = vmul.f32 %v2659_v51, %v3234_v2  ;;  %v904_v14 = vmul.f32 %v2595_v27, %v3039_v26 }
  0xc7   : > { %v912_v52 = vmul.f32 %v2624_v38, %v3176_v47  ;;  %2018 = vmatmul.mubr.f32.gmra.mrb[4].mxu0 %v609_v21  ;;  %v3300_v7 = vsel %vm523_vm3, %v516_v59, %v522_v46  ;;  %v562_v17 = vmul.f32 %v2604_v30, %v3030_v5  ;;  %v885_v50 = vsel %vm370_vm2, %v873_v62, %v867_v19 }
  0xc8   : > { %v469_v43 = vadd.f32 %v461_v34, %v449_v22  ;;  %v1051_v40 = vadd.f32 %v1043_v0, %v1035_v20  ;;  %v3308_v35 = vsel %vm260_vm0, %v885_v50, 0.0  ;;  %v944_v12 = vmul.f32 %v2620_v36, %v2935_v28 }
  0xc9   : > { %v920_v26 = vadd.f32 %v912_v52, %v904_v14  ;;  %v928_v11 = vmul.f32 %v2671_v57, %v3308_v35  ;;  %v991_v24 = vrot.slane %v3269_v55, 1  ;;  %v997_v5 = vrot.slane %v3278_v44, 1 }
  0xca   : > { %v489_v34 = vadd.f32 %v481_v15, %v469_v43  ;;  %v1067_v21 = vadd.f32 %v1059_v25, %v1051_v40  ;;  %v582_v0 = vmul.f32 %v2697_v6, %v3169_v13  ;;  %v960_v22 = vmul.f32 %v2622_v37, %v3141_v60 }
  0xcb   : > { %v3322_v20 = vsel %vm370_vm2, %v363_v61, %v369_v8  ;;  %v936_v15 = vadd.f32 %v928_v11, %v920_v26  ;;  %v3326_v14 = vsel %vm523_vm3, %v991_v24, %v997_v5  ;;  %v410_v52 = vmul.f32 %v2595_v27, %v3053_v56 }
  0xcc   : > { %4071 = vst [vmem:[#allocation18_spill] sm:$0xff] %v3322_v20  ;;  %v509_v28 = vadd.f32 %v501_v33, %v489_v34  ;;  %2042 = vmatmul.mubr.f32.gmra.mrb[4].mxu1 %v1067_v21  ;;  %v602_v25 = vmul.f32 %v2754_v29, %v3300_v7  ;;  %v976_v43 = vmul.f32 %v2659_v51, %v3269_v55 }
  0xcd   : > { %v422_v61 = vmul.f32 %v2624_v38, %v3188_v49  ;;  %v442_v8 = vmul.f32 %v2671_v57, %v3322_v20  ;;  %v952_v50 = vadd.f32 %v944_v12, %v936_v15  ;;  %v1028_v40 = vmul.f32 %v2604_v30, %v3063_v10 }
  0xce   : > { %v570_v33 = vadd.f32 %v562_v17, %v509_v28  ;;  %v1044_v56 = vmul.f32 %v2697_v6, %v3194_v63  ;;  %v1060_v26 = vmul.f32 %v2754_v29, %v3326_v14  ;;  %v462_v11 = vmul.f32 %v2620_v36, %v2865_v48 }
  0xcf   : > { %v430_v34 = vadd.f32 %v422_v61, %v410_v52  ;;  %v535_v21 = vsel %vm523_vm3, %v522_v46, %v516_v59  ;;  %v968_v17 = vadd.f32 %v960_v22, %v952_v50  ;;  %v482_v10 = vmul.f32 %v2622_v37, %v3113_v18 }
  0xd0   : > { %v590_v20 = vadd.f32 %v582_v0, %v570_v33  ;;  %v3352_v12 = vsel %vm370_vm2, %v867_v19, %v873_v62  ;;  %v3356_v15 = vsel %vm271_vm1, %v535_v21, 0.0  ;;  %v905_v48 = vmul.f32 %v2595_v27, %v3093_v32  ;;  %v3367_v62 = vld [vmem:[%s2571_s25 + $0x50] sm:$0xff]  ;;  %v3374_v33 = vld [vmem:[%s2571_s25 + $0x58] sm:$0xff] }
  0xd1   : > { %v450_v28 = vadd.f32 %v442_v8, %v430_v34  ;;  %v913_v59 = vmul.f32 %v2624_v38, %v3219_v45  ;;  %v984_v0 = vadd.f32 %v976_v43, %v968_v17  ;;  %v502_v22 = vmul.f32 %v2659_v51, %v3241_v31 }
  0xd2   : > { %v610_v46 = vadd.f32 %v602_v25, %v590_v20  ;;  %v929_v19 = vmul.f32 %v2671_v57, %v3352_v12  ;;  %v563_v61 = vmul.f32 %v2604_v30, %v3099_v58  ;;  %v945_v32 = vmul.f32 %v2620_v36, %v2998_v42 }
  0xd3   : > { %v470_v52 = vadd.f32 %v462_v11, %v450_v28  ;;  %v921_v8 = vadd.f32 %v913_v59, %v905_v48  ;;  %v1036_v20 = vadd.f32 %v1028_v40, %v984_v0  ;;  %v583_v25 = vmul.f32 %v2697_v6, %v3223_v41 }
  0xd4   : > { %2020 = vmatprep.mubr.f32.mxu0 %v610_v46  ;;  %v603_v43 = vmul.f32 %v2754_v29, %v3356_v15  ;;  %v961_v50 = vmul.f32 %v2622_v37, %v3144_v16  ;;  %v1009_v11 = vsel %vm523_vm3, %v997_v5, %v991_v24  ;;  %v635_v42 = vrot.slane %v3367_v62, 7 }
  0xd5   : > { %v490_v34 = vadd.f32 %v482_v10, %v470_v52  ;;  %v937_v58 = vadd.f32 %v929_v19, %v921_v8  ;;  %v1052_v21 = vadd.f32 %v1044_v56, %v1036_v20  ;;  %v977_v40 = vmul.f32 %v2659_v51, %v3278_v44 }
  0xd6   : > { %v641_v17 = vrot.slane %v3374_v33, 7  ;;  %v669_v28 = vmul.f32 %v2595_v27, %v3148_v54  ;;  %v1029_v10 = vmul.f32 %v2604_v30, %v3130_v53  ;;  %v677_v24 = vmul.f32 %v2624_v38, %v3273_v9  ;;  %v3403_v54 = vld [vmem:[%s2571_s25 + $0xd0] sm:$0xff] }
  0xd7   : > { %v510_v48 = vadd.f32 %v502_v22, %v490_v34  ;;  %v953_v59 = vadd.f32 %v945_v32, %v937_v58  ;;  %v1068_v5 = vadd.f32 %v1060_v26, %v1052_v21  ;;  %v3396_v56 = vsel %vm271_vm1, %v1009_v11, 0.0  ;;  %v3410_v26 = vld [vmem:[%s2571_s25 + $0xd8] sm:$0xff] }
  0xd8   : > { %v1045_v46 = vmul.f32 %v2697_v6, %v3264_v39  ;;  %v653_v0 = vsel %vm370_vm2, %v641_v17, %v635_v42  ;;  %v685_v52 = vadd.f32 %v677_v24, %v669_v28  ;;  %v709_v32 = vmul.f32 %v2620_v36, %v3106_v23 }
  0xd9   : > { %v571_v22 = vadd.f32 %v563_v61, %v510_v48  ;;  %v969_v19 = vadd.f32 %v961_v50, %v953_v59  ;;  %v3407_v53 = vsel %vm260_vm0, %v653_v0, 0.0  ;;  %2044 = vmatprep.mubr.f32.mxu1 %v1068_v5  ;;  %v759_v20 = vrot.slane %v3367_v62, 1 }
  0xda   : > { %v693_v8 = vmul.f32 %v2671_v57, %v3407_v53  ;;  %v765_v34 = vrot.slane %v3374_v33, 1  ;;  %v1061_v58 = vmul.f32 %v2754_v29, %v3396_v56  ;;  %v1093_v11 = vrot.slane %v3403_v54, 7 }
  0xdb   : > { %v591_v61 = vadd.f32 %v583_v25, %v571_v22  ;;  %v985_v50 = vadd.f32 %v977_v40, %v969_v19  ;;  %v725_v28 = vmul.f32 %v2622_v37, %v3234_v2  ;;  %v1099_v48 = vrot.slane %v3410_v26, 7 }
  0xdc   : > { %v701_v21 = vadd.f32 %v693_v8, %v685_v52  ;;  %v1127_v23 = vmul.f32 %v2595_v27, %v3176_v47  ;;  %v741_v25 = vmul.f32 %v2659_v51, %v3367_v62  ;;  %v1135_v40 = vmul.f32 %v2624_v38, %v3308_v35 }
  0xdd   : > { %v611_v59 = vadd.f32 %v603_v43, %v591_v61  ;;  %v1037_v24 = vadd.f32 %v1029_v10, %v985_v50  ;;  %v3432_v0 = vsel %vm523_vm3, %v759_v20, %v765_v34  ;;  %v793_v22 = vmul.f32 %v2604_v30, %v3169_v13 }
  0xde   : > { %v717_v5 = vadd.f32 %v709_v32, %v701_v21  ;;  %v1111_v19 = vsel %vm370_vm2, %v1099_v48, %v1093_v11  ;;  %v1143_v10 = vadd.f32 %v1135_v40, %v1127_v23  ;;  %v1167_v52 = vmul.f32 %v2620_v36, %v3141_v60 }
  0xdf   : > { %2021 = vmatmul.mubr.f32.gmra.mrb[6].mxu0 %v611_v59  ;;  %v1053_v47 = vadd.f32 %v1045_v46, %v1037_v24  ;;  %v3440_v43 = vsel %vm260_vm0, %v1111_v19, 0.0  ;;  %v1217_v61 = vrot.slane %v3403_v54, 1  ;;  %v1223_v13 = vrot.slane %v3410_v26, 1 }
  0xe0   : > { %v733_v8 = vadd.f32 %v725_v28, %v717_v5  ;;  %v1151_v32 = vmul.f32 %v2671_v57, %v3440_v43  ;;  %v809_v46 = vmul.f32 %v2697_v6, %v3300_v7  ;;  %v1183_v21 = vmul.f32 %v2622_v37, %v3269_v55  ;;  %v4072_v5 = vld [vmem:[#allocation18_spill] sm:$0xff] }
  0xe1   : > { %v1069_v50 = vadd.f32 %v1061_v58, %v1053_v47  ;;  %v3454_v23 = vsel %vm370_vm2, %v635_v42, %v641_v17  ;;  %v3458_v59 = vsel %vm523_vm3, %v1217_v61, %v1223_v13  ;;  %v670_v24 = vmul.f32 %v2595_v27, %v3188_v49 }
  0xe2   : > { %v749_v60 = vadd.f32 %v741_v25, %v733_v8  ;;  %v1159_v28 = vadd.f32 %v1151_v32, %v1143_v10  ;;  %v825_v58 = vmul.f32 %v2754_v29, %v3432_v0  ;;  %v1199_v40 = vmul.f32 %v2659_v51, %v3403_v54 }
  0xe3   : > { %2045 = vmatmul.mubr.f32.gmra.mrb[6].mxu1 %v1069_v50  ;;  %v678_v42 = vmul.f32 %v2624_v38, %v4072_v5  ;;  %v694_v17 = vmul.f32 %v2671_v57, %v3454_v23  ;;  %v1251_v47 = vmul.f32 %v2604_v30, %v3194_v63  ;;  %v1267_v27 = vmul.f32 %v2697_v6, %v3326_v14 }
  0xe4   : > { %v801_v25 = vadd.f32 %v793_v22, %v749_v60  ;;  %v1175_v19 = vadd.f32 %v1167_v52, %v1159_v28  ;;  %v1283_v49 = vmul.f32 %v2754_v29, %v3458_v59  ;;  %v710_v8 = vmul.f32 %v2620_v36, %v3113_v18  ;;  %v3490_v28 = vld [vmem:[#allocation7] ss:$0 sm:$0xff] }
  0xe5   : > { %v686_v10 = vadd.f32 %v678_v42, %v670_v24  ;;  %v777_v32 = vsel %vm523_vm3, %v765_v34, %v759_v20  ;;  %v726_v52 = vmul.f32 %v2622_v37, %v3241_v31  ;;  %v3484_v30 = vsel %vm370_vm2, %v1093_v11, %v1099_v48  ;;  %v3501_v48 = vld [vmem:[%s2571_s25 + $0x60] sm:$0xff] }
  0xe6   : > { %v817_v50 = vadd.f32 %v809_v46, %v801_v25  ;;  %v1191_v22 = vadd.f32 %v1183_v21, %v1175_v19  ;;  %v3488_v60 = vsel %vm271_vm1, %v777_v32, 0.0  ;;  %v1128_v36 = vmul.f32 %v3490_v28, %v3219_v45  ;;  %v3503_v21 = vld [vmem:[#allocation7 + $0x2] ss:$0 sm:$0xff]  ;;  %v3507_v42 = vld [vmem:[#allocation7 + $0x1] ss:$0 sm:$0xff] }
  0xe7   : > { %v702_v63 = vadd.f32 %v694_v17, %v686_v10  ;;  %v1136_v18 = vmul.f32 %v2624_v38, %v3352_v12  ;;  %v742_v34 = vmul.f32 %v2659_v51, %v3374_v33  ;;  %v1152_v11 = vmul.f32 %v2671_v57, %v3484_v30  ;;  %v3518_v17 = vld [vmem:[#allocation7 + $0x4] ss:$0 sm:$0xff] }
  0xe8   : > { %v833_v20 = vadd.f32 %v825_v58, %v817_v50  ;;  %v1207_v37 = vadd.f32 %v1199_v40, %v1191_v22  ;;  %v794_v24 = vmul.f32 %v3503_v21, %v3223_v41  ;;  %v1168_v38 = vmul.f32 %v3507_v42, %v3144_v16  ;;  %v3512_v58 = vld [vmem:[%s2571_s25 + $0x68] sm:$0xff] }
  0xe9   : > { %v718_v46 = vadd.f32 %v710_v8, %v702_v63  ;;  %v1144_v45 = vadd.f32 %v1136_v18, %v1128_v36  ;;  %v810_v57 = vmul.f32 %v2697_v6, %v3356_v15  ;;  %v826_v40 = vmul.f32 %v2754_v29, %v3488_v60  ;;  %v3525_v8 = vld [vmem:[#allocation7 + $0x7] ss:$0 sm:$0xff] }
  0xea   : > { %2023 = vmatprep.mubr.f32.mxu0 %v833_v20  ;;  %v1259_v51 = vadd.f32 %v1251_v47, %v1207_v37  ;;  %v1184_v41 = vmul.f32 %v3518_v17, %v3278_v44  ;;  %v1235_v16 = vsel %vm523_vm3, %v1223_v13, %v1217_v61  ;;  %v636_v10 = vrot.slane %v3501_v48, 7  ;;  %v3534_v13 = vld [vmem:[#allocation7 + $0x3] ss:$0 sm:$0xff] }
  0xeb   : > { %v734_v25 = vadd.f32 %v726_v52, %v718_v46  ;;  %v1160_v19 = vadd.f32 %v1152_v11, %v1144_v45  ;;  %v1200_v32 = vmul.f32 %v3525_v8, %v3410_v26  ;;  %v642_v50 = vrot.slane %v3512_v58, 7  ;;  %v3547_v37 = vld [vmem:[%s2571_s25 + $0xe0] sm:$0xff] }
  0xec   : > { %v1275_v47 = vadd.f32 %v1267_v27, %v1259_v51  ;;  %v671_v22 = vmul.f32 %v3490_v28, %v3273_v9  ;;  %v1252_v61 = vmul.f32 %v3503_v21, %v3264_v39  ;;  %v679_v27 = vmul.f32 %v3534_v13, %v3407_v53  ;;  %v3556_v45 = vld [vmem:[#allocation7 + $0x6] ss:$0 sm:$0xff] }
  0xed   : > { %v750_v52 = vadd.f32 %v742_v34, %v734_v25  ;;  %v1176_v63 = vadd.f32 %v1168_v38, %v1160_v19  ;;  %v3540_v18 = vsel %vm271_vm1, %v1235_v16, 0.0  ;;  %v1268_v20 = vmul.f32 %v2697_v6, %v3396_v56 }
  0xee   : > { %v1291_v36 = vadd.f32 %v1283_v49, %v1275_v47  ;;  %v654_v9 = vsel %vm370_vm2, %v642_v50, %v636_v10  ;;  %v687_v46 = vadd.f32 %v679_v27, %v671_v22  ;;  %v3554_v49 = vld [vmem:[%s2571_s25 + $0xe8] sm:$0xff]  ;;  %v711_v38 = vmul.f32 %v3507_v42, %v3234_v2 }
  0xef   : > { %v802_v34 = vadd.f32 %v794_v24, %v750_v52  ;;  %v1192_v39 = vadd.f32 %v1184_v41, %v1176_v63  ;;  %v3551_v11 = vsel %vm260_vm0, %v654_v9, 0.0  ;;  %v760_v51 = vrot.slane %v3501_v48, 1 }
  0xf0   : > { %2047 = vmatprep.mubr.f32.mxu1 %v1291_v36  ;;  %v695_v6 = vmul.f32 %v3556_v45, %v3551_v11  ;;  %v766_v24 = vrot.slane %v3512_v58, 1  ;;  %v1284_v19 = vmul.f32 %v2754_v29, %v3540_v18  ;;  %v1094_v16 = vrot.slane %v3547_v37, 7 }
  0xf1   : > { %v818_v41 = vadd.f32 %v810_v57, %v802_v34  ;;  %v1208_v25 = vadd.f32 %v1200_v32, %v1192_v39  ;;  %v727_v22 = vmul.f32 %v3518_v17, %v3367_v62  ;;  %v1100_v52 = vrot.slane %v3554_v49, 7 }
  0xf2   : > { %v703_v47 = vadd.f32 %v695_v6, %v687_v46  ;;  %v1129_v2 = vmul.f32 %v3490_v28, %v3308_v35  ;;  %v743_v57 = vmul.f32 %v3525_v8, %v3501_v48  ;;  %v1137_v32 = vmul.f32 %v3534_v13, %v3440_v43 }
  0xf3   : > { %v834_v63 = vadd.f32 %v826_v40, %v818_v41  ;;  %v1260_v27 = vadd.f32 %v1252_v61, %v1208_v25  ;;  %v3578_v36 = vsel %vm523_vm3, %v760_v51, %v766_v24  ;;  %v795_v9 = vmul.f32 %v3503_v21, %v3300_v7  ;;  %v3594_v25 = vld [vmem:[#allocation7 + $0x5] ss:$0 sm:$0xff] }
  0xf4   : > { %v719_v29 = vadd.f32 %v711_v38, %v703_v47  ;;  %v1112_v34 = vsel %vm370_vm2, %v1100_v52, %v1094_v16  ;;  %v1145_v61 = vadd.f32 %v1137_v32, %v1129_v2  ;;  %v1169_v39 = vmul.f32 %v3507_v42, %v3269_v55 }
  0xf5   : > { %2024 = vmatmul.mubr.f32.gmra.mrb[8].mxu0 %v834_v63  ;;  %v1276_v35 = vadd.f32 %v1268_v20, %v1260_v27  ;;  %v3586_v40 = vsel %vm260_vm0, %v1112_v34, 0.0  ;;  %v1218_v38 = vrot.slane %v3547_v37, 1  ;;  %v1224_v7 = vrot.slane %v3554_v49, 1  ;;  %v3610_v27 = vld [vmem:[#allocation7 + $0x8] ss:$0 sm:$0xff] }
  0xf6   : > { %v735_v46 = vadd.f32 %v727_v22, %v719_v29  ;;  %v1153_v6 = vmul.f32 %v3556_v45, %v3586_v40  ;;  %v811_v20 = vmul.f32 %v3594_v25, %v3432_v0  ;;  %v1185_v47 = vmul.f32 %v3518_v17, %v3403_v54 }
  0xf7   : > { %v1292_v41 = vadd.f32 %v1284_v19, %v1276_v35  ;;  %v3602_v55 = vsel %vm370_vm2, %v636_v10, %v642_v50  ;;  %v3606_v63 = vsel %vm523_vm3, %v1218_v38, %v1224_v7  ;;  %v672_v19 = vmul.f32 %v3490_v28, %v4072_v5 }
  0xf8   : > { %4073 = vst [vmem:[#allocation23_spill] sm:$0xff] %v3602_v55  ;;  %v751_v22 = vadd.f32 %v743_v57, %v735_v46  ;;  %v1161_v2 = vadd.f32 %v1153_v6, %v1145_v61  ;;  %v827_v32 = vmul.f32 %v3610_v27, %v3578_v36  ;;  %v680_v29 = vmul.f32 %v3534_v13, %v3454_v23 }
  0xf9   : > { %2048 = vmatmul.mubr.f32.gmra.mrb[8].mxu1 %v1292_v41  ;;  %v696_v10 = vmul.f32 %v3556_v45, %v3602_v55  ;;  %v1201_v34 = vmul.f32 %v3525_v8, %v3547_v37  ;;  %v1253_v5 = vmul.f32 %v3503_v21, %v3326_v14  ;;  %v1269_v35 = vmul.f32 %v3594_v25, %v3458_v59 }
  0xfa   : > { %v803_v50 = vadd.f32 %v795_v9, %v751_v22  ;;  %v1177_v57 = vadd.f32 %v1169_v39, %v1161_v2  ;;  %v1285_v61 = vmul.f32 %v3610_v27, %v3606_v63  ;;  %v688_v46 = vadd.f32 %v680_v29, %v672_v19 }
  0xfb   : > { %v712_v6 = vmul.f32 %v3507_v42, %v3241_v31  ;;  %v778_v9 = vsel %vm523_vm3, %v766_v24, %v760_v51  ;;  %v3632_v39 = vsel %vm370_vm2, %v1094_v16, %v1100_v52  ;;  %v728_v22 = vmul.f32 %v3518_v17, %v3374_v33 }
  0xfc   : > { %v819_v41 = vadd.f32 %v811_v20, %v803_v50  ;;  %v1193_v55 = vadd.f32 %v1185_v47, %v1177_v57  ;;  %v704_v14 = vadd.f32 %v696_v10, %v688_v46  ;;  %v1130_v2 = vmul.f32 %v3490_v28, %v3352_v12 }
  0xfd   : > { %v1138_v19 = vmul.f32 %v3534_v13, %v3484_v30  ;;  %v744_v47 = vmul.f32 %v3525_v8, %v3512_v58  ;;  %v1154_v51 = vmul.f32 %v3556_v45, %v3632_v39  ;;  %v3646_v16 = vsel %vm271_vm1, %v778_v9, 0.0 }
  0xfe   : > { %v835_v31 = vadd.f32 %v827_v32, %v819_v41  ;;  %v1209_v20 = vadd.f32 %v1201_v34, %v1193_v55  ;;  %v720_v24 = vadd.f32 %v712_v6, %v704_v14  ;;  %v1170_v12 = vmul.f32 %v3507_v42, %v3278_v44  ;;  %v4074_v6 = vld [vmem:[#allocation19_spill] sm:$0xff] }
  0xff   : > { %v1146_v52 = vadd.f32 %v1138_v19, %v1130_v2  ;;  %v796_v55 = vmul.f32 %v3503_v21, %v3356_v15  ;;  %v812_v32 = vmul.f32 %v3594_v25, %v3488_v60  ;;  %v1186_v10 = vmul.f32 %v3518_v17, %v3410_v26 }
 0x100   : > { %2026 = vmatprep.mubr.f32.mxu0 %v835_v31  ;;  %v1261_v29 = vadd.f32 %v1253_v5, %v1209_v20  ;;  %v736_v50 = vadd.f32 %v728_v22, %v720_v24  ;;  %v1236_v34 = vsel %vm523_vm3, %v1224_v7, %v1218_v38  ;;  %v673_v44 = vmul.f32 %v3490_v28, %v3407_v53  ;;  %v3671_v7 = vld [vmem:[%s2571_s25 + $0xf0] sm:$0xff]  ;;  %v3674_v53 = vld [vmem:[%s2571_s25 + $0xf8] sm:$0xff] }
 0x101   : > { %v1162_v57 = vadd.f32 %v1154_v51, %v1146_v52  ;;  %v828_v46 = vmul.f32 %v3610_v27, %v3646_v16  ;;  %v681_v15 = vmul.f32 %v3534_v13, %v3551_v11  ;;  %v697_v41 = vmul.f32 %v3556_v45, %v4074_v6 }
 0x102   : > { %v1277_v5 = vadd.f32 %v1269_v35, %v1261_v29  ;;  %v752_v9 = vadd.f32 %v744_v47, %v736_v50  ;;  %v1202_v22 = vmul.f32 %v3525_v8, %v3554_v49  ;;  %v1254_v38 = vmul.f32 %v3503_v21, %v3396_v56 }
 0x103   : > { %v1178_v14 = vadd.f32 %v1170_v12, %v1162_v57  ;;  %v3678_v2 = vsel %vm271_vm1, %v1236_v34, 0.0  ;;  %v689_v19 = vadd.f32 %v681_v15, %v673_v44  ;;  %v713_v31 = vmul.f32 %v3507_v42, %v3367_v62  ;;  %v3695_v57 = vld [vmem:[%s2571_s25 + $0x70] sm:$0xff] }
 0x104   : > { %v1293_v35 = vadd.f32 %v1285_v61, %v1277_v5  ;;  %v804_v20 = vadd.f32 %v796_v55, %v752_v9  ;;  %v1270_v51 = vmul.f32 %v3594_v25, %v3540_v18  ;;  %v729_v56 = vmul.f32 %v3518_v17, %v3501_v48 }
 0x105   : > { %v1194_v47 = vadd.f32 %v1186_v10, %v1178_v14  ;;  %v705_v24 = vadd.f32 %v697_v41, %v689_v19  ;;  %v1095_v61 = vrot.slane %v3671_v7, 7  ;;  %v1101_v52 = vrot.slane %v3674_v53, 7 }
 0x106   : > { %2050 = vmatprep.mubr.f32.mxu1 %v1293_v35  ;;  %v1131_v12 = vmul.f32 %v3490_v28, %v3440_v43  ;;  %v820_v29 = vadd.f32 %v812_v32, %v804_v20  ;;  %v1286_v62 = vmul.f32 %v3610_v27, %v3678_v2  ;;  %v1139_v55 = vmul.f32 %v3534_v13, %v3586_v40 }
 0x107   : > { %v1210_v50 = vadd.f32 %v1202_v22, %v1194_v47  ;;  %v721_v10 = vadd.f32 %v713_v31, %v705_v24  ;;  %v745_v34 = vmul.f32 %v3695_v57, %v3525_v8  ;;  %v797_v44 = vmul.f32 %v3503_v21, %v3432_v0  ;;  %v4075_v47 = vld [vmem:[#allocation23_spill] sm:$0xff] }
 0x108   : > { %v1113_v43 = vsel %vm370_vm2, %v1101_v52, %v1095_v61  ;;  %v836_v32 = vadd.f32 %v828_v46, %v820_v29  ;;  %v1147_v41 = vadd.f32 %v1139_v55, %v1131_v12  ;;  %v813_v14 = vmul.f32 %v3594_v25, %v3578_v36  ;;  %v4076_v12 = vld [vmem:[#allocation21_spill] sm:$0xff]  ;;  %v4077_v29 = vld [vmem:[#allocation24_spill] sm:$0xff] }
 0x109   : > { %v1262_v5 = vadd.f32 %v1254_v38, %v1210_v50  ;;  %v3705_v15 = vsel %vm260_vm0, %v1113_v43, 0.0  ;;  %v737_v9 = vadd.f32 %v729_v56, %v721_v10  ;;  %v1171_v0 = vmul.f32 %v3507_v42, %v3403_v54 }
 0x10a   : > { %v1155_v22 = vmul.f32 %v3556_v45, %v3705_v15  ;;  %2027 = vmatmul.mubr.f32.gmra.mrb[10].mxu0 %v836_v32  ;;  %v1219_v46 = vrot.slane %v3671_v7, 1  ;;  %v1225_v38 = vrot.slane %v3674_v53, 1  ;;  %v674_v3 = vmul.f32 %v3490_v28, %v3454_v23 }
 0x10b   : > { %v1278_v35 = vadd.f32 %v1270_v51, %v1262_v5  ;;  %v753_v19 = vadd.f32 %v745_v34, %v737_v9  ;;  %v1187_v20 = vmul.f32 %v3518_v17, %v3547_v37  ;;  %v682_v56 = vmul.f32 %v3534_v13, %v4075_v47 }
 0x10c   : > { %v1163_v31 = vadd.f32 %v1155_v22, %v1147_v41  ;;  %v829_v54 = vmul.f32 %v3610_v27, %v4076_v12  ;;  %v1203_v51 = vmul.f32 %v3525_v8, %v3671_v7  ;;  %v698_v50 = vmul.f32 %v3556_v45, %v4077_v29 }
 0x10d   : > { %v1294_v24 = vadd.f32 %v1286_v62, %v1278_v35  ;;  %v805_v55 = vadd.f32 %v797_v44, %v753_v19  ;;  %v690_v10 = vadd.f32 %v682_v56, %v674_v3  ;;  %v714_v34 = vmul.f32 %v3507_v42, %v3374_v33  ;;  %v3750_v19 = vld [vmem:[%s2571_s25 + $0x78] sm:$0xff] }
 0x10e   : > { %v1179_v23 = vadd.f32 %v1171_v0, %v1163_v31  ;;  %v3731_v62 = vsel %vm523_vm3, %v1219_v46, %v1225_v38  ;;  %v1255_v43 = vmul.f32 %v3503_v21, %v3458_v59  ;;  %v730_v32 = vmul.f32 %v3518_v17, %v3512_v58 }
 0x10f   : > { %2051 = vmatmul.mubr.f32.gmra.mrb[10].mxu1 %v1294_v24  ;;  %v821_v5 = vadd.f32 %v813_v14, %v805_v55  ;;  %v706_v44 = vadd.f32 %v698_v50, %v690_v10  ;;  %v3739_v9 = vsel %vm370_vm2, %v1095_v61, %v1101_v52  ;;  %v1271_v33 = vmul.f32 %v3594_v25, %v3606_v63 }
 0x110   : > { %v1195_v41 = vadd.f32 %v1187_v20, %v1179_v23  ;;  %v1132_v22 = vmul.f32 %v3490_v28, %v3484_v30  ;;  %v1140_v0 = vmul.f32 %v3534_v13, %v3632_v39  ;;  %v1156_v59 = vmul.f32 %v3556_v45, %v3739_v9 }
 0x111   : > { %v837_v35 = vadd.f32 %v829_v54, %v821_v5  ;;  %v722_v3 = vadd.f32 %v714_v34, %v706_v44  ;;  %v746_v61 = vmul.f32 %v3750_v19, %v3525_v8  ;;  %v1287_v52 = vmul.f32 %v3610_v27, %v3731_v62  ;;  %v4078_v34 = vld [vmem:[#allocation26_spill] sm:$0xff] }
 0x112   : > { %v1211_v14 = vadd.f32 %v1203_v51, %v1195_v41  ;;  %v798_v30 = vmul.f32 %v3503_v21, %v3488_v60  ;;  %v1148_v31 = vadd.f32 %v1140_v0, %v1132_v22  ;;  %v1172_v20 = vmul.f32 %v3507_v42, %v3410_v26 }
 0x113   : > { %2029 = vmatprep.mubr.f32.mxu0 %v837_v35  ;;  %v738_v24 = vadd.f32 %v730_v32, %v722_v3  ;;  %v814_v54 = vmul.f32 %v3594_v25, %v3646_v16  ;;  %v1188_v51 = vmul.f32 %v3518_v17, %v3554_v49  ;;  %v1237_v55 = vsel %vm523_vm3, %v1225_v38, %v1219_v46  ;;  %v4079_v32 = vld [vmem:[#allocation20_spill] sm:$0xff] }
 0x114   : > { %v1263_v56 = vadd.f32 %v1255_v43, %v1211_v14  ;;  %v1164_v50 = vadd.f32 %v1156_v59, %v1148_v31  ;;  %v675_v60 = vmul.f32 %v3490_v28, %v3551_v11  ;;  %v683_v23 = vmul.f32 %v3534_v13, %v4074_v6  ;;  %v4080_v14 = vld [vmem:[#allocation14_spill] sm:$0xff] }
 0x115   : > { %v754_v10 = vadd.f32 %v746_v61, %v738_v24  ;;  %v830_v43 = vmul.f32 %v3610_v27, %v4078_v34  ;;  %v699_v5 = vmul.f32 %v3556_v45, %v4079_v32  ;;  %v1204_v44 = vmul.f32 %v3525_v8, %v3674_v53  ;;  %v4081_v61 = vld [vmem:[#allocation16_spill] sm:$0xff] }
 0x116   : > { %v1279_v26 = vadd.f32 %v1271_v33, %v1263_v56  ;;  %v1180_v41 = vadd.f32 %v1172_v20, %v1164_v50  ;;  %v691_v1 = vadd.f32 %v683_v23, %v675_v60  ;;  %v715_v46 = vmul.f32 %v3507_v42, %v3501_v48 }
 0x117   : > { %v806_v38 = vadd.f32 %v798_v30, %v754_v10  ;;  %v3780_v6 = vsel %vm271_vm1, %v1237_v55, 0.0  ;;  %v1256_v33 = vmul.f32 %v3503_v21, %v3540_v18  ;;  %v731_v59 = vmul.f32 %v3695_v57, %v3518_v17  ;;  %v2190_v57 = vld [vmem:[%s2571_s25 + $0x80] sm:$0xff]  ;;  %v4082_v10 = vld [vmem:[#allocation25_spill] sm:$0xff] }
 0x118   : > { %v1295_v11 = vadd.f32 %v1287_v52, %v1279_v26  ;;  %v1196_v22 = vadd.f32 %v1188_v51, %v1180_v41  ;;  %v707_v0 = vadd.f32 %v699_v5, %v691_v1  ;;  %v1133_v35 = vmul.f32 %v3490_v28, %v3586_v40 }
 0x119   : > { %v1158_v48 = vmul.f32 %v3556_v45, %v4080_v14  ;;  %v822_v3 = vadd.f32 %v814_v54, %v806_v38  ;;  %v1141_v4 = vmul.f32 %v3534_v13, %v3705_v15  ;;  %v1157_v52 = vmul.f32 %v3556_v45, %v4081_v61 }
 0x11a   : > { %2053 = vmatprep.mubr.f32.mxu1 %v1295_v11  ;;  %v1212_v18 = vadd.f32 %v1204_v44, %v1196_v22  ;;  %v1272_v30 = vmul.f32 %v3594_v25, %v3678_v2  ;;  %v723_v31 = vadd.f32 %v715_v46, %v707_v0  ;;  %v747_v20 = vmul.f32 %v2190_v57, %v3525_v8 }
 0x11b   : > { %v838_v40 = vadd.f32 %v830_v43, %v822_v3  ;;  %v1288_v56 = vmul.f32 %v3610_v27, %v3780_v6  ;;  %v1149_v24 = vadd.f32 %v1141_v4, %v1133_v35  ;;  %v1173_v54 = vmul.f32 %v3507_v42, %v3547_v37  ;;  %v4084_v4 = vld [vmem:[#allocation15_spill] sm:$0xff] }
 0x11c   : > { %v1264_v15 = vadd.f32 %v1256_v33, %v1212_v18  ;;  %v739_v51 = vadd.f32 %v731_v59, %v723_v31  ;;  %v799_v50 = vmul.f32 %v3503_v21, %v3578_v36  ;;  %v676_v55 = vmul.f32 %v3490_v28, %v4075_v47  ;;  %v4083_v36 = vld [vmem:[#allocation22_spill] sm:$0xff]  ;;  %v2191_v59 = vld [vmem:[%s2571_s25 + $0x88] sm:$0xff] }
 0x11d   : > { %2030 = vmatmul.mubr.f32.gmra.mrb[12].mxu0 %v838_v40  ;;  %v1165_v60 = vadd.f32 %v1157_v52, %v1149_v24  ;;  %v1189_v23 = vmul.f32 %v3518_v17, %v3671_v7  ;;  %v684_v26 = vmul.f32 %v3534_v13, %v4077_v29  ;;  %v700_v43 = vmul.f32 %v3556_v45, %v4082_v10 }
 0x11e   : > { %v1280_v37 = vadd.f32 %v1272_v30, %v1264_v15  ;;  %v755_v32 = vadd.f32 %v747_v20, %v739_v51  ;;  %v815_v5 = vmul.f32 %v3594_v25, %v4076_v12  ;;  %v831_v41 = vmul.f32 %v3610_v27, %v4083_v36 }
 0x11f   : > { %v1181_v47 = vadd.f32 %v1173_v54, %v1165_v60  ;;  %v1205_v44 = vmul.f32 0.0, %v3525_v8  ;;  %v692_v1 = vadd.f32 %v684_v26, %v676_v55  ;;  %v716_v7 = vmul.f32 %v3507_v42, %v3512_v58  ;;  %v4086_v54 = vld [vmem:[#allocation17_spill] sm:$0xff] }
 0x120   : > { %v1296_v29 = vadd.f32 %v1288_v56, %v1280_v37  ;;  %v807_v46 = vadd.f32 %v799_v50, %v755_v32  ;;  %v1257_v45 = vmul.f32 %v3503_v21, %v3606_v63  ;;  %v1134_v11 = vmul.f32 %v3490_v28, %v3632_v39  ;;  %v3852_v50 = vld [vmem:[%s3976_s3] ss:$0 sm:$0xff] }
 0x121   : > { %v1197_v12 = vadd.f32 %v1189_v23, %v1181_v47  ;;  %v708_v38 = vadd.f32 %v700_v43, %v692_v1  ;;  %v732_v33 = vmul.f32 %v3750_v19, %v3518_v17  ;;  %v1142_v22 = vmul.f32 %v3534_v13, %v3739_v9 }
 0x122   : > { %2054 = vmatmul.mubr.f32.gmra.mrb[12].mxu1 %v1296_v29  ;;  %v823_v0 = vadd.f32 %v815_v5, %v807_v46  ;;  %v1273_v58 = vmul.f32 %v3594_v25, %v3731_v62  ;;  %v748_v35 = vmul.f32 %v2191_v59, %v3525_v8  ;;  %v1174_v28 = vmul.f32 %v3507_v42, %v3554_v49  ;;  %v4085_v49 = vld [vmem:[#allocation27_spill] sm:$0xff] }
 0x123   : > { %v1213_v63 = vadd.f32 %v1205_v44, %v1197_v12  ;;  %v724_v14 = vadd.f32 %v716_v7, %v708_v38  ;;  %v1150_v3 = vadd.f32 %v1142_v22, %v1134_v11  ;;  %v1289_v19 = vmul.f32 %v3610_v27, %v4084_v4 }
 0x124   : > { %v839_v39 = vadd.f32 %v831_v41, %v823_v0  ;;  %v800_v13 = vmul.f32 %v3503_v21, %v3646_v16  ;;  %v1190_v62 = vmul.f32 %v3518_v17, %v3674_v53  ;;  %v816_v30 = vmul.f32 %v3594_v25, %v4078_v34 }
 0x125   : > { %v1265_v9 = vadd.f32 %v1257_v45, %v1213_v63  ;;  %v740_v61 = vadd.f32 %v732_v33, %v724_v14  ;;  %v1166_v52 = vadd.f32 %v1158_v48, %v1150_v3  ;;  %v832_v31 = vmul.f32 %v3610_v27, %v4085_v49 }
 0x126   : > { %2032 = vmatprep.mubr.f32.mxu0 %v839_v39  ;;  %v1258_v16 = vmul.f32 %v3503_v21, %v3678_v2  ;;  %v1274_v17 = vmul.f32 %v3594_v25, %v3780_v6  ;;  %v1290_v34 = vmul.f32 %v3610_v27, %v4086_v54 }
 0x127   : > { %v1281_v8 = vadd.f32 %v1273_v58, %v1265_v9  ;;  %v756_v18 = vadd.f32 %v748_v35, %v740_v61  ;;  %v1182_v42 = vadd.f32 %v1174_v28, %v1166_v52 }
 0x129   : > { %v1297_v57 = vadd.f32 %v1289_v19, %v1281_v8  ;;  %v808_v20 = vadd.f32 %v800_v13, %v756_v18  ;;  %v1198_v40 = vadd.f32 %v1190_v62, %v1182_v42 }
 0x12b   : > { %2056 = vmatprep.mubr.f32.mxu1 %v1297_v57  ;;  %v824_v48 = vadd.f32 %v816_v30, %v808_v20  ;;  %v1214_v56 = vadd.f32 %v1205_v44, %v1198_v40 }
 0x12d   : > { %v840_v53 = vadd.f32 %v832_v31, %v824_v48  ;;  %v1266_v24 = vadd.f32 %v1258_v16, %v1214_v56 }
 0x12f   : > { %2033 = vmatmul.mubr.f32.gmra.mrb[14].mxu0 %v840_v53  ;;  %v1282_v15 = vadd.f32 %v1274_v17, %v1266_v24 }
 0x131   : > { %v1298_v51 = vadd.f32 %v1290_v34, %v1282_v15 }
 0x133   : > { %2057 = vmatmul.mubr.f32.gmra.mrb[14].mxu1 %v1298_v51 }
 0x16f   : > { %v2013_v21 = vpop.f32.mrb[0].mxu0 }
 0x170   : > { %v1434_v2 = vadd.f32 %v2013_v21, %v3852_v50  ;;  %v1428_v55 = vpop.f32.mrb[1].mxu0 }
 0x171   : > { %v1429_v25 = vadd.f32 %v3852_v50, %v1428_v55 }
 0x172   : > { %v1588_v6 = vadd.f32 3.0, %v1434_v2 }
 0x173   : > { %v1587_v60 = vadd.f32 3.0, %v1429_v25 }
 0x174   : > { %v1620_v23 = vmax.f32 %v1588_v6, 0.0 }
 0x175   : > { %v1619_v27 = vmax.f32 %v1587_v60, 0.0 }
 0x176   : > { %v1652_v26 = vmin.f32 %v1620_v23, 6.0 }
 0x177   : > { %v2037_v10 = vpop.f32.mrb[0].mxu1  ;;  %v1651_v37 = vmin.f32 %v1619_v27, 6.0 }
 0x178   : > { %v1514_v43 = vadd.f32 %v2037_v10, %v3852_v50  ;;  %v1508_v32 = vpop.f32.mrb[1].mxu1  ;;  %v1684_v5 = vmul.f32 %v1652_v26, %v1434_v2 }
 0x179   : > { %v1509_v36 = vadd.f32 %v3852_v50, %v1508_v32  ;;  %v1683_v47 = vmul.f32 %v1651_v37, %v1429_v25 }
 0x17a   : > { %v1604_v41 = vadd.f32 3.0, %v1514_v43  ;;  %v1716_v44 = vmul.f32 0.16666667, %v1684_v5 }
 0x17b   : > { %v1603_v1 = vadd.f32 3.0, %v1509_v36  ;;  %v1715_v29 = vmul.f32 0.16666667, %v1683_v47 }
 0x17c   : > { %v1636_v7 = vmax.f32 %v1604_v41, 0.0  ;;  %1748 = vst [vmem:[%s3860_s11 + $0x8] sm:$0xff] %v1716_v44 }
 0x17d   : > { %v1635_v46 = vmax.f32 %v1603_v1, 0.0  ;;  %1747 = vst [vmem:[%s3860_s11] sm:$0xff] %v1715_v29 }
 0x17e   : > { %v1668_v45 = vmin.f32 %v1636_v7, 6.0 }
 0x17f   : > { %v1667_v11 = vmin.f32 %v1635_v46, 6.0 }
 0x180   : > { %v1700_v12 = vmul.f32 %v1668_v45, %v1514_v43 }
 0x181   : > { %v1699_v38 = vmul.f32 %v1667_v11, %v1509_v36 }
 0x182   : > { %v1732_v33 = vmul.f32 0.16666667, %v1700_v12 }
 0x183   : > { %v1731_v22 = vmul.f32 0.16666667, %v1699_v38 }
 0x184   : > { %v2016_v0 = vpop.f32.mrb[2].mxu0  ;;  %1764 = vst [vmem:[%s3860_s11 + $0x88] sm:$0xff] %v1732_v33 }
 0x185   : > { %v1444_v58 = vadd.f32 %v2016_v0, %v3852_v50  ;;  %v1438_v59 = vpop.f32.mrb[3].mxu0  ;;  %1763 = vst [vmem:[%s3860_s11 + $0x80] sm:$0xff] %v1731_v22 }
 0x186   : > { %v1439_v35 = vadd.f32 %v3852_v50, %v1438_v59 }
 0x187   : > { %v1590_v63 = vadd.f32 3.0, %v1444_v58 }
 0x188   : > { %v1589_v14 = vadd.f32 3.0, %v1439_v35 }
 0x189   : > { %v1622_v3 = vmax.f32 %v1590_v63, 0.0 }
 0x18a   : > { %v1621_v28 = vmax.f32 %v1589_v14, 0.0 }
 0x18b   : > { %v1654_v39 = vmin.f32 %v1622_v3, 6.0  ;;  %v2040_v4 = vpop.f32.mrb[2].mxu1 }
 0x18c   : > { %v1524_v19 = vadd.f32 %v2040_v4, %v3852_v50  ;;  %v1653_v13 = vmin.f32 %v1621_v28, 6.0  ;;  %v1518_v9 = vpop.f32.mrb[3].mxu1 }
 0x18d   : > { %v1686_v61 = vmul.f32 %v1654_v39, %v1444_v58  ;;  %v1519_v52 = vadd.f32 %v3852_v50, %v1518_v9 }
 0x18e   : > { %v1606_v62 = vadd.f32 3.0, %v1524_v19  ;;  %v1685_v8 = vmul.f32 %v1653_v13, %v1439_v35 }
 0x18f   : > { %v1718_v18 = vmul.f32 0.16666667, %v1686_v61  ;;  %v1605_v30 = vadd.f32 3.0, %v1519_v52 }
 0x190   : > { %v1638_v42 = vmax.f32 %v1606_v62, 0.0  ;;  %v1717_v49 = vmul.f32 0.16666667, %v1685_v8 }
 0x191   : > { %1750 = vst [vmem:[%s3860_s11 + $0x18] sm:$0xff] %v1718_v18  ;;  %v1637_v31 = vmax.f32 %v1605_v30, 0.0 }
 0x192   : > { %v1670_v57 = vmin.f32 %v1638_v42, 6.0  ;;  %1749 = vst [vmem:[%s3860_s11 + $0x10] sm:$0xff] %v1717_v49 }
 0x193   : > { %v1669_v20 = vmin.f32 %v1637_v31, 6.0 }
 0x194   : > { %v1702_v40 = vmul.f32 %v1670_v57, %v1524_v19 }
 0x195   : > { %v1701_v16 = vmul.f32 %v1669_v20, %v1519_v52 }
 0x196   : > { %v1734_v48 = vmul.f32 0.16666667, %v1702_v40 }
 0x197   : > { %v1733_v56 = vmul.f32 0.16666667, %v1701_v16 }
 0x198   : > { %1766 = vst [vmem:[%s3860_s11 + $0x98] sm:$0xff] %v1734_v48 }
 0x199   : > { %1765 = vst [vmem:[%s3860_s11 + $0x90] sm:$0xff] %v1733_v56 }
 0x19a   : > { %v2019_v17 = vpop.f32.mrb[4].mxu0 }
 0x19b   : > { %v1454_v53 = vadd.f32 %v2019_v17, %v3852_v50  ;;  %v1448_v24 = vpop.f32.mrb[5].mxu0 }
 0x19c   : > { %v1449_v54 = vadd.f32 %v3852_v50, %v1448_v24 }
 0x19d   : > { %v1592_v34 = vadd.f32 3.0, %v1454_v53 }
 0x19e   : > { %v1591_v15 = vadd.f32 3.0, %v1449_v54 }
 0x19f   : > { %v1624_v51 = vmax.f32 %v1592_v34, 0.0  ;;  %v2043_v21 = vpop.f32.mrb[4].mxu1 }
 0x1a0   : > { %v1534_v2 = vadd.f32 %v2043_v21, %v3852_v50  ;;  %v1623_v55 = vmax.f32 %v1591_v15, 0.0  ;;  %v1528_v25 = vpop.f32.mrb[5].mxu1 }
 0x1a1   : > { %v1656_v6 = vmin.f32 %v1624_v51, 6.0  ;;  %v1529_v60 = vadd.f32 %v3852_v50, %v1528_v25 }
 0x1a2   : > { %v1608_v23 = vadd.f32 3.0, %v1534_v2  ;;  %v1655_v27 = vmin.f32 %v1623_v55, 6.0 }
 0x1a3   : > { %v1688_v26 = vmul.f32 %v1656_v6, %v1454_v53  ;;  %v1607_v10 = vadd.f32 3.0, %v1529_v60 }
 0x1a4   : > { %v1640_v43 = vmax.f32 %v1608_v23, 0.0  ;;  %v1687_v37 = vmul.f32 %v1655_v27, %v1449_v54 }
 0x1a5   : > { %v1720_v32 = vmul.f32 0.16666667, %v1688_v26  ;;  %v1639_v5 = vmax.f32 %v1607_v10, 0.0 }
 0x1a6   : > { %v1672_v36 = vmin.f32 %v1640_v43, 6.0  ;;  %v1719_v41 = vmul.f32 0.16666667, %v1687_v37 }
 0x1a7   : > { %1752 = vst [vmem:[%s3860_s11 + $0x28] sm:$0xff] %v1720_v32  ;;  %v1671_v47 = vmin.f32 %v1639_v5, 6.0 }
 0x1a8   : > { %v1704_v44 = vmul.f32 %v1672_v36, %v1534_v2  ;;  %1751 = vst [vmem:[%s3860_s11 + $0x20] sm:$0xff] %v1719_v41 }
 0x1a9   : > { %v1703_v1 = vmul.f32 %v1671_v47, %v1529_v60 }
 0x1aa   : > { %v1736_v7 = vmul.f32 0.16666667, %v1704_v44 }
 0x1ab   : > { %v1735_v29 = vmul.f32 0.16666667, %v1703_v1 }
 0x1ac   : > { %1768 = vst [vmem:[%s3860_s11 + $0xa8] sm:$0xff] %v1736_v7 }
 0x1ad   : > { %1767 = vst [vmem:[%s3860_s11 + $0xa0] sm:$0xff] %v1735_v29 }
 0x1b2   : > { %v2022_v46 = vpop.f32.mrb[6].mxu0 }
 0x1b3   : > { %v1464_v45 = vadd.f32 %v2022_v46, %v3852_v50  ;;  %v1458_v11 = vpop.f32.mrb[7].mxu0 }
 0x1b4   : > { %v1459_v12 = vadd.f32 %v3852_v50, %v1458_v11 }
 0x1b5   : > { %v1594_v38 = vadd.f32 3.0, %v1464_v45 }
 0x1b6   : > { %v2046_v33 = vpop.f32.mrb[6].mxu1  ;;  %v1593_v22 = vadd.f32 3.0, %v1459_v12 }
 0x1b7   : > { %v1626_v0 = vmax.f32 %v1594_v38, 0.0  ;;  %v1544_v58 = vadd.f32 %v2046_v33, %v3852_v50  ;;  %v1538_v59 = vpop.f32.mrb[7].mxu1 }
 0x1b8   : > { %v1625_v35 = vmax.f32 %v1593_v22, 0.0  ;;  %v1539_v63 = vadd.f32 %v3852_v50, %v1538_v59 }
 0x1b9   : > { %v1658_v14 = vmin.f32 %v1626_v0, 6.0  ;;  %v1610_v3 = vadd.f32 3.0, %v1544_v58 }
 0x1ba   : > { %v1657_v28 = vmin.f32 %v1625_v35, 6.0  ;;  %v1609_v39 = vadd.f32 3.0, %v1539_v63 }
 0x1bb   : > { %v1690_v4 = vmul.f32 %v1658_v14, %v1464_v45  ;;  %v1642_v19 = vmax.f32 %v1610_v3, 0.0 }
 0x1bc   : > { %v1689_v13 = vmul.f32 %v1657_v28, %v1459_v12  ;;  %v1641_v9 = vmax.f32 %v1609_v39, 0.0 }
 0x1bd   : > { %v1722_v61 = vmul.f32 0.16666667, %v1690_v4  ;;  %v1674_v52 = vmin.f32 %v1642_v19, 6.0 }
 0x1be   : > { %v1721_v62 = vmul.f32 0.16666667, %v1689_v13  ;;  %v1673_v8 = vmin.f32 %v1641_v9, 6.0 }
 0x1bf   : > { %1754 = vst [vmem:[%s3860_s11 + $0x38] sm:$0xff] %v1722_v61  ;;  %v1706_v18 = vmul.f32 %v1674_v52, %v1544_v58 }
 0x1c0   : > { %1753 = vst [vmem:[%s3860_s11 + $0x30] sm:$0xff] %v1721_v62  ;;  %v1705_v30 = vmul.f32 %v1673_v8, %v1539_v63 }
 0x1c1   : > { %v1738_v42 = vmul.f32 0.16666667, %v1706_v18 }
 0x1c2   : > { %v1737_v49 = vmul.f32 0.16666667, %v1705_v30 }
 0x1c3   : > { %1770 = vst [vmem:[%s3860_s11 + $0xb8] sm:$0xff] %v1738_v42 }
 0x1c4   : > { %1769 = vst [vmem:[%s3860_s11 + $0xb0] sm:$0xff] %v1737_v49 }
 0x1c8   : > { %v2025_v31 = vpop.f32.mrb[8].mxu0 }
 0x1c9   : > { %v1474_v57 = vadd.f32 %v2025_v31, %v3852_v50  ;;  %v1468_v20 = vpop.f32.mrb[9].mxu0 }
 0x1ca   : > { %v1469_v40 = vadd.f32 %v3852_v50, %v1468_v20 }
 0x1cb   : > { %v1596_v16 = vadd.f32 3.0, %v1474_v57 }
 0x1cc   : > { %v2049_v48 = vpop.f32.mrb[8].mxu1  ;;  %v1595_v56 = vadd.f32 3.0, %v1469_v40 }
 0x1cd   : > { %v1628_v17 = vmax.f32 %v1596_v16, 0.0  ;;  %v1554_v53 = vadd.f32 %v2049_v48, %v3852_v50  ;;  %v1548_v24 = vpop.f32.mrb[9].mxu1 }
 0x1ce   : > { %v1627_v54 = vmax.f32 %v1595_v56, 0.0  ;;  %v1549_v34 = vadd.f32 %v3852_v50, %v1548_v24 }
 0x1cf   : > { %v1660_v15 = vmin.f32 %v1628_v17, 6.0  ;;  %v1612_v51 = vadd.f32 3.0, %v1554_v53 }
 0x1d0   : > { %v1659_v21 = vmin.f32 %v1627_v54, 6.0  ;;  %v1611_v2 = vadd.f32 3.0, %v1549_v34 }
 0x1d1   : > { %v1692_v55 = vmul.f32 %v1660_v15, %v1474_v57  ;;  %v1644_v25 = vmax.f32 %v1612_v51, 0.0 }
 0x1d2   : > { %v1691_v6 = vmul.f32 %v1659_v21, %v1469_v40  ;;  %v1643_v60 = vmax.f32 %v1611_v2, 0.0 }
 0x1d3   : > { %v1724_v23 = vmul.f32 0.16666667, %v1692_v55  ;;  %v1676_v27 = vmin.f32 %v1644_v25, 6.0 }
 0x1d4   : > { %v1723_v26 = vmul.f32 0.16666667, %v1691_v6  ;;  %v1675_v10 = vmin.f32 %v1643_v60, 6.0 }
 0x1d5   : > { %1756 = vst [vmem:[%s3860_s11 + $0x48] sm:$0xff] %v1724_v23  ;;  %v1708_v43 = vmul.f32 %v1676_v27, %v1554_v53 }
 0x1d6   : > { %1755 = vst [vmem:[%s3860_s11 + $0x40] sm:$0xff] %v1723_v26  ;;  %v1707_v37 = vmul.f32 %v1675_v10, %v1549_v34 }
 0x1d7   : > { %v1740_v32 = vmul.f32 0.16666667, %v1708_v43 }
 0x1d8   : > { %v1739_v5 = vmul.f32 0.16666667, %v1707_v37 }
 0x1d9   : > { %1772 = vst [vmem:[%s3860_s11 + $0xc8] sm:$0xff] %v1740_v32 }
 0x1da   : > { %1771 = vst [vmem:[%s3860_s11 + $0xc0] sm:$0xff] %v1739_v5 }
 0x1dd   : > { %v2028_v36 = vpop.f32.mrb[10].mxu0 }
 0x1de   : > { %v1484_v41 = vadd.f32 %v2028_v36, %v3852_v50  ;;  %v1478_v47 = vpop.f32.mrb[11].mxu0 }
 0x1df   : > { %v1479_v44 = vadd.f32 %v3852_v50, %v1478_v47 }
 0x1e0   : > { %v1598_v1 = vadd.f32 3.0, %v1484_v41 }
 0x1e1   : > { %v1597_v29 = vadd.f32 3.0, %v1479_v44 }
 0x1e2   : > { %v2052_v7 = vpop.f32.mrb[10].mxu1  ;;  %v1630_v46 = vmax.f32 %v1598_v1, 0.0 }
 0x1e3   : > { %v1564_v45 = vadd.f32 %v2052_v7, %v3852_v50  ;;  %v1558_v11 = vpop.f32.mrb[11].mxu1  ;;  %v1629_v12 = vmax.f32 %v1597_v29, 0.0 }
 0x1e4   : > { %v1559_v38 = vadd.f32 %v3852_v50, %v1558_v11  ;;  %v1662_v33 = vmin.f32 %v1630_v46, 6.0 }
 0x1e5   : > { %v1614_v22 = vadd.f32 3.0, %v1564_v45  ;;  %v1661_v0 = vmin.f32 %v1629_v12, 6.0 }
 0x1e6   : > { %v1613_v58 = vadd.f32 3.0, %v1559_v38  ;;  %v1694_v59 = vmul.f32 %v1662_v33, %v1484_v41 }
 0x1e7   : > { %v1646_v35 = vmax.f32 %v1614_v22, 0.0  ;;  %v1693_v63 = vmul.f32 %v1661_v0, %v1479_v44 }
 0x1e8   : > { %v1645_v14 = vmax.f32 %v1613_v58, 0.0  ;;  %v1726_v3 = vmul.f32 0.16666667, %v1694_v59 }
 0x1e9   : > { %v1678_v28 = vmin.f32 %v1646_v35, 6.0  ;;  %v1725_v39 = vmul.f32 0.16666667, %v1693_v63 }
 0x1ea   : > { %v1677_v4 = vmin.f32 %v1645_v14, 6.0  ;;  %1758 = vst [vmem:[%s3860_s11 + $0x58] sm:$0xff] %v1726_v3 }
 0x1eb   : > { %v1710_v19 = vmul.f32 %v1678_v28, %v1564_v45  ;;  %1757 = vst [vmem:[%s3860_s11 + $0x50] sm:$0xff] %v1725_v39 }
 0x1ec   : > { %v1709_v13 = vmul.f32 %v1677_v4, %v1559_v38 }
 0x1ed   : > { %v1742_v9 = vmul.f32 0.16666667, %v1710_v19 }
 0x1ee   : > { %v1741_v61 = vmul.f32 0.16666667, %v1709_v13 }
 0x1ef   : > { %1774 = vst [vmem:[%s3860_s11 + $0xd8] sm:$0xff] %v1742_v9 }
 0x1f0   : > { %1773 = vst [vmem:[%s3860_s11 + $0xd0] sm:$0xff] %v1741_v61  ;;  %v2031_v52 = vpop.f32.mrb[12].mxu0 }
 0x1f1   : > { %v1494_v62 = vadd.f32 %v2031_v52, %v3852_v50  ;;  %v1488_v8 = vpop.f32.mrb[13].mxu0 }
 0x1f2   : > { %v1489_v18 = vadd.f32 %v3852_v50, %v1488_v8 }
 0x1f3   : > { %v1600_v30 = vadd.f32 3.0, %v1494_v62 }
 0x1f4   : > { %v1599_v42 = vadd.f32 3.0, %v1489_v18 }
 0x1f5   : > { %v1632_v49 = vmax.f32 %v1600_v30, 0.0  ;;  %v2055_v31 = vpop.f32.mrb[12].mxu1 }
 0x1f6   : > { %v1574_v57 = vadd.f32 %v2055_v31, %v3852_v50  ;;  %v1631_v20 = vmax.f32 %v1599_v42, 0.0  ;;  %v1568_v40 = vpop.f32.mrb[13].mxu1 }
 0x1f7   : > { %v1664_v16 = vmin.f32 %v1632_v49, 6.0  ;;  %v1569_v48 = vadd.f32 %v3852_v50, %v1568_v40 }
 0x1f8   : > { %v1616_v56 = vadd.f32 3.0, %v1574_v57  ;;  %v1663_v17 = vmin.f32 %v1631_v20, 6.0 }
 0x1f9   : > { %v1696_v53 = vmul.f32 %v1664_v16, %v1494_v62  ;;  %v1615_v24 = vadd.f32 3.0, %v1569_v48 }
 0x1fa   : > { %v1648_v54 = vmax.f32 %v1616_v56, 0.0  ;;  %v1695_v34 = vmul.f32 %v1663_v17, %v1489_v18 }
 0x1fb   : > { %v1728_v15 = vmul.f32 0.16666667, %v1696_v53  ;;  %v1647_v51 = vmax.f32 %v1615_v24, 0.0 }
 0x1fc   : > { %v1680_v21 = vmin.f32 %v1648_v54, 6.0  ;;  %v1727_v2 = vmul.f32 0.16666667, %v1695_v34 }
 0x1fd   : > { %1760 = vst [vmem:[%s3860_s11 + $0x68] sm:$0xff] %v1728_v15  ;;  %v1679_v55 = vmin.f32 %v1647_v51, 6.0 }
 0x1fe   : > { %v1712_v25 = vmul.f32 %v1680_v21, %v1574_v57  ;;  %1759 = vst [vmem:[%s3860_s11 + $0x60] sm:$0xff] %v1727_v2 }
 0x1ff   : > { %v1711_v6 = vmul.f32 %v1679_v55, %v1569_v48 }
 0x200   : > { %v1744_v60 = vmul.f32 0.16666667, %v1712_v25 }
 0x201   : > { %v1743_v23 = vmul.f32 0.16666667, %v1711_v6 }
 0x202   : > { %1776 = vst [vmem:[%s3860_s11 + $0xe8] sm:$0xff] %v1744_v60  ;;  %v2034_v27 = vpop.f32.mrb[14].mxu0 }
 0x203   : > { %1775 = vst [vmem:[%s3860_s11 + $0xe0] sm:$0xff] %v1743_v23  ;;  %v1504_v26 = vadd.f32 %v2034_v27, %v3852_v50  ;;  %v1498_v10 = vpop.f32.mrb[15].mxu0 }
 0x204   : > { %v1499_v43 = vadd.f32 %v3852_v50, %v1498_v10 }
 0x205   : > { %v1602_v37 = vadd.f32 3.0, %v1504_v26 }
 0x206   : > { %v2058_v32 = vpop.f32.mrb[14].mxu1  ;;  %v1601_v5 = vadd.f32 3.0, %v1499_v43 }
 0x207   : > { %v1634_v36 = vmax.f32 %v1602_v37, 0.0  ;;  %v1584_v41 = vadd.f32 %v2058_v32, %v3852_v50  ;;  %v1578_v47 = vpop.f32.mrb[15].mxu1 }
 0x208   : > { %v1633_v44 = vmax.f32 %v1601_v5, 0.0  ;;  %v1579_v1 = vadd.f32 %v3852_v50, %v1578_v47 }
 0x209   : > { %v1666_v7 = vmin.f32 %v1634_v36, 6.0  ;;  %v1618_v29 = vadd.f32 3.0, %v1584_v41 }
 0x20a   : > { %v1665_v46 = vmin.f32 %v1633_v44, 6.0  ;;  %v1617_v45 = vadd.f32 3.0, %v1579_v1 }
 0x20b   : > { %v1698_v11 = vmul.f32 %v1666_v7, %v1504_v26  ;;  %v1650_v12 = vmax.f32 %v1618_v29, 0.0 }
 0x20c   : > { %v1697_v38 = vmul.f32 %v1665_v46, %v1499_v43  ;;  %v1649_v33 = vmax.f32 %v1617_v45, 0.0 }
 0x20d   : > { %v1730_v22 = vmul.f32 0.16666667, %v1698_v11  ;;  %v1682_v0 = vmin.f32 %v1650_v12, 6.0 }
 0x20e   : > { %v1729_v58 = vmul.f32 0.16666667, %v1697_v38  ;;  %v1681_v59 = vmin.f32 %v1649_v33, 6.0 }
 0x20f   : > { %1762 = vst [vmem:[%s3860_s11 + $0x78] sm:$0xff] %v1730_v22  ;;  %v1714_v50 = vmul.f32 %v1682_v0, %v1584_v41 }
 0x210   : > { %1761 = vst [vmem:[%s3860_s11 + $0x70] sm:$0xff] %v1729_v58  ;;  %v1713_v35 = vmul.f32 %v1681_v59, %v1579_v1 }
 0x211   : > { %v1746_v63 = vmul.f32 0.16666667, %v1714_v50 }
 0x212   : > { %v1745_v14 = vmul.f32 0.16666667, %v1713_v35 }
 0x213   : > { %1778 = vst [vmem:[%s3860_s11 + $0xf8] sm:$0xff] %v1746_v63 }
 0x214   : > { %1777 = vst [vmem:[%s3860_s11 + $0xf0] sm:$0xff] %v1745_v14 }
 0x215   : > { %2291 = shalt.err (!%p2288_p1)
}
 0x216   : > { %s2292_s9 = scalar_lea.hbm %s3925_s28, 4096  ;;  %s2296_s25 = scalar_lea.hbm %s3977_s4, 8192 }
 0x217   : > { %p2293_p13 = scmp.ne.s32.totalorder %s3925_s28, %s2292_s9  ;;  %p2297_p4 = scmp.lt.u32.totalorder %s3925_s28, %s3977_s4 }
 0x218   : > { %p2298_p5 = scmp.lt.u32.totalorder %s2296_s25, %s2292_s9  ;;  %p2300_p11 = scmp.lt.u32.totalorder %s2292_s9, %s3925_s28 }
 0x219   : > { %p2294_p6 = pnand %p2293_p13, %p4087_p0 }
 0x21a   : > { %p2299_p8 = por %p2298_p5, %p2297_p4 }
 0x21b   : > { %p2295_p10 = pneg %p2294_p6 }
 0x21c   : > { %p2301_p2 = por %p2300_p11, %p2299_p8 }
 0x21e   : > { %p2302_p3 = pnand %p2301_p2, %p2295_p10 }
 0x220   : > { %2305 = shalt.err (!%p2302_p3)
}
 0x221   : > { %s2357_s11 = smov 128   ;;  %s2358_s12 = smov 8  }
 0x222   : > { %2117 = dma.vmem_to_hbm [thread:$0]  (%p4087_p0), %s3927_s30, 4096, %s3925_s28, %s1780_s19, %s2357_s11, %s2357_s11, %s2358_s12  }
 0x223 PF: > { %s1808_s6 = sand.u32 1, %s2336_s15   ;;  %p4088_p7 = scmp.ne.s32.totalorder %s4019_s22, 0 }
 0x224   : > { %p4089_p9 = scmp.ge.s32.totalorder %s2348_s18, 2  ;;  %s1809_s7 = scalar_lea.sflag [#allocation6], %s1808_s6 }
 0x226   : > { %p2131_p12 = pnand %p4089_p9, %p4088_p7 }
 0x228   : > { %2331 = dma.done.wait (!%p2131_p12), %s1809_s7, 4096  }
 0x229   : > { %2333 = vsyncadd (!%p2131_p12), %s1809_s7, 4294963200  ;;  %p18_p1 = scmp.ge.s32.totalorder %s2500_s26, 4   ;;  %s4090_s15 = smov %s2340_s16 }
 0x22a   : > { %s4091_s16 = smov %s2344_s17  ;;  %s4092_s17 = smov %s2516_s14 }
 0x22b   : > { %s4093_s18 = smov %s2500_s26  ;;  %20 = sbr.rel (!%p18_p1) target bundleno = 6 (0x6), region = 96 }
 0x232   :  { %1814 = vsyncpa [#allocation5], 1 }
 0x233   :  { %1816 = vsyncpa [#allocation5 + $0x1], 1 }
 0x234   :  { %1817 = vsyncpa [#allocation8], 1 }
 0x235   :  { %1818 = vsyncpa [#allocation6], 1 }
 0x236   :  { %1820 = vsyncpa [#allocation6 + $0x1], 1 }

</bundles_post_ra>
